<compile_context>
chip_gen: v7x
topology: tpu7x:2x2x1
jax: 0.10.0
libtpu: 0.0.40
codegen_flags: <defaults>
</compile_context>

<pallas_src>
from functools import partial

import jax
import jax.numpy as jnp
from jax.experimental import pallas as pl
from jax.experimental.pallas import tpu as pltpu


SAMPLE_RATE = 16000
DOWNSAMPLE_RATE = 160          # get_downsample_rate() == 160
OUTPUT_DIM = 64
R_TILE_MAX = 256               # final-frame rows per grid step (multiple of 8)
HALO_ROWS = 8                  # extra superframe rows fetched per tile (>=4 needed)

# Synthetic PASE-like encoder: 4 x (Conv1d -> BN(eval) -> PReLU), "valid"
# convolutions (the wrapper right-pads the waveform), strides multiply to 160.
#   (C_in, C_out, K, stride)
LAYER_CFG = [
    (1,  16, 30, 10),
    (16, 32,  8,  4),
    (32, 64,  4,  2),
    (64, 64,  4,  2),
]


def _round_up(x, m):
    return ((x + m - 1) // m) * m


# ----------------------------------------------------------------------------
# Fused 4-layer kernel: 4 block-banded MXU matmuls + folded-BN/PReLU epilogues
# ----------------------------------------------------------------------------
def _pase_fused_kernel(x_ref, xh_ref,
                       w0_ref, w1_ref, w2_ref, w3_ref,
                       p0_ref, p1_ref, p2_ref, p3_ref,
                       o_ref,
                       xbuf, h0buf, h1buf, h2buf, *, r_tile):
    # x_ref : (r_tile, 160)      current tile of input superframes (f32)
    # xh_ref: (HALO_ROWS, 160)   halo superframes just past the tile (f32)
    # w*_ref: block-banded, BN-scale-folded im2col weights (bf16)
    # p*_ref: (2, lanes) f32 -- row 0 = folded bias+BN shift, row 1 = PReLU alpha
    # o_ref : (r_tile, 64)       final features (f32)
    # *buf  : f32 VMEM scratch (intermediates never touch HBM)

    # Stage tile + halo into ONE contiguous buffer so every conv window of
    # every layer is two CONTIGUOUS row slices concatenated along lanes.
    xbuf[pl.ds(0, r_tile), :] = x_ref[...]
    xbuf[pl.ds(r_tile, HALO_ROWS), :] = xh_ref[...]

    def layer(src_ref, n_rows, w_ref, p_ref):
        # rows t and t+1 of `src_ref` hold every input frame feeding output row t
        patch = jnp.concatenate(
            [src_ref[pl.ds(0, n_rows), :], src_ref[pl.ds(1, n_rows), :]], axis=-1)
        acc = jnp.dot(patch.astype(jnp.bfloat16), w_ref[...],
                      preferred_element_type=jnp.float32)        # MXU, f32 acc
        acc = acc + p_ref[pl.ds(0, 1), :]                        # bias + BN shift
        return jnp.where(acc > 0, acc, acc * p_ref[pl.ds(1, 1), :])  # PReLU (f32)

    h0buf[pl.ds(0, r_tile + 3), :] = layer(xbuf,  r_tile + 3, w0_ref, p0_ref)
    h1buf[pl.ds(0, r_tile + 2), :] = layer(h0buf, r_tile + 2, w1_ref, p1_ref)
    h2buf[pl.ds(0, r_tile + 1), :] = layer(h1buf, r_tile + 1, w2_ref, p2_ref)
    o_ref[...] = layer(h2buf, r_tile, w3_ref, p3_ref).astype(o_ref.dtype)


def pase_encoder(params, wav_batch):
    """wav_batch: (B, T) padded waveforms -> (B, T // 160, 64) features."""
    B, T = wav_batch.shape
    t_final = max(1, T // DOWNSAMPLE_RATE)

    r_tile = min(R_TILE_MAX, max(8, _round_up(t_final, 8)))
    if B == 1 and t_final > 8:
        # keep >=2 parallel time tiles so the 2nd TensorCore (v7x) gets work
        r_tile = min(r_tile, max(8, _round_up(pl.cdiv(t_final, 2), 8)))
    n_t = pl.cdiv(t_final, r_tile)
    rows = n_t * r_tile + HALO_ROWS              # superframes incl. halo/padding

    # Right-pad with zeros (covers the receptive field of the last frames and
    # the tile/halo padding), then frame into 160-sample superframes: free
    # layout plumbing, 1 superframe == 1 final output frame.
    x = jnp.pad(wav_batch.astype(jnp.float32),
                ((0, 0), (0, rows * DOWNSAMPLE_RATE - T)))
    x = x.reshape(B, rows, DOWNSAMPLE_RATE)

    w0, w1, w2, w3 = (lp["w"] for lp in params)
    p0, p1, p2, p3 = (lp["p"] for lp in params)

    kernel = partial(_pase_fused_kernel, r_tile=r_tile)
    out = pl.pallas_call(
        kernel,
        out_shape=jax.ShapeDtypeStruct((B, n_t * r_tile, OUTPUT_DIM), jnp.float32),
        grid=(B, n_t),
        in_specs=[
            # main tile of superframes (halo-tiled: length-independent VMEM)
            pl.BlockSpec((None, r_tile, DOWNSAMPLE_RATE), lambda b, t: (b, t, 0)),
            # 8-row halo just past the tile (same array, second window)
            pl.BlockSpec((None, HALO_ROWS, DOWNSAMPLE_RATE),
                         lambda b, t: (b, (t + 1) * (r_tile // HALO_ROWS), 0)),
            pl.BlockSpec(w0.shape, lambda b, t: (0, 0)),
            pl.BlockSpec(w1.shape, lambda b, t: (0, 0)),
            pl.BlockSpec(w2.shape, lambda b, t: (0, 0)),
            pl.BlockSpec(w3.shape, lambda b, t: (0, 0)),
            pl.BlockSpec(p0.shape, lambda b, t: (0, 0)),
            pl.BlockSpec(p1.shape, lambda b, t: (0, 0)),
            pl.BlockSpec(p2.shape, lambda b, t: (0, 0)),
            pl.BlockSpec(p3.shape, lambda b, t: (0, 0)),
        ],
        out_specs=pl.BlockSpec((None, r_tile, OUTPUT_DIM), lambda b, t: (b, t, 0)),
        scratch_shapes=[
            pltpu.VMEM((r_tile + HALO_ROWS, DOWNSAMPLE_RATE), jnp.float32),
            pltpu.VMEM((r_tile + HALO_ROWS, w0.shape[1]), jnp.float32),
            pltpu.VMEM((r_tile + HALO_ROWS, w1.shape[1]), jnp.float32),
            pltpu.VMEM((r_tile + HALO_ROWS, w2.shape[1]), jnp.float32),
        ],
        compiler_params=pltpu.CompilerParams(
            dimension_semantics=("parallel", "parallel")),
    )(x, x, w0, w1, w2, w3, p0, p1, p2, p3)

    return out[:, :t_final, :]       # single trim, once, after the fused stack


# ----------------------------------------------------------------------------
# Parameters: synthetic conv/BN/PReLU, folded + block-banded for the kernel
# ----------------------------------------------------------------------------
def init_params(key):
    """Deterministic synthetic parameters (no checkpoint)."""
    # frames-per-final-frame for each layer = product of the strides after it
    ms, prod = [], 1
    for (_, _, _, s) in reversed(LAYER_CFG):
        ms.append(prod)
        prod *= s
    ms = ms[::-1]
    assert prod == DOWNSAMPLE_RATE

    params = []
    for (cin, cout, k, s), m in zip(LAYER_CFG, ms):
        key, kw, kb, kg, kbe, kmu, kv = jax.random.split(key, 7)
        w = jax.random.normal(kw, (k, cin, cout), jnp.float32) / jnp.sqrt(k * cin)
        b = 0.1 * jax.random.normal(kb, (cout,), jnp.float32)
        gamma = 1.0 + 0.1 * jax.random.normal(kg, (cout,), jnp.float32)
        beta = 0.1 * jax.random.normal(kbe, (cout,), jnp.float32)
        mu = 0.1 * jax.random.normal(kmu, (cout,), jnp.float32)
        var = jnp.abs(1.0 + 0.1 * jax.random.normal(kv, (cout,), jnp.float32))
        scale = gamma / jnp.sqrt(var + 1e-5)          # eval-mode BatchNorm
        shift = beta + (b - mu) * scale               # conv bias folded in
        alpha = jnp.full((cout,), 0.25, jnp.float32)  # PReLU default

        # Fold BN scale into the im2col weight (in f32, then cast to bf16),
        # and place it block-banded over one superframe: output slot j reads
        # the previous layer's frames starting at frame offset s*j.
        w2d = w.reshape(k * cin, cout) * scale[None, :]
        in_lanes = 2 * m * s * cin                    # two framed rows
        out_lanes = m * cout
        wbig = jnp.zeros((in_lanes, out_lanes), jnp.float32)
        for j in range(m):
            wbig = wbig.at[j * s * cin:j * s * cin + k * cin,
                           j * cout:(j + 1) * cout].set(w2d)
        p = jnp.stack([jnp.tile(shift, m), jnp.tile(alpha, m)], axis=0)  # (2, lanes)

        params.append(dict(
            w=wbig.astype(jnp.bfloat16), p=p, m=m,
            # f32 originals kept only for the pure-JAX reference check
            w_raw=w, shift_raw=shift, alpha_raw=alpha, scale_raw=scale,
            k=k, s=s, cin=cin, cout=cout))
    return params


def pase_reference(params, wav_batch):
    """Plain-JAX (unfused, f32 activations) reference for correctness checks."""
    B, T = wav_batch.shape
    t_final = max(1, T // DOWNSAMPLE_RATE)
    need = (t_final + HALO_ROWS) * DOWNSAMPLE_RATE
    x = jnp.pad(wav_batch.astype(jnp.float32), ((0, 0), (0, need - T)))[..., None]
    for lp in params:
        k, s, cin, cout = lp["k"], lp["s"], lp["cin"], lp["cout"]
        w_eff = (lp["w_raw"].reshape(k * cin, cout) * lp["scale_raw"][None, :]
                 ).astype(jnp.bfloat16).astype(jnp.float32).reshape(k, cin, cout)
        t_out = (x.shape[1] - k) // s + 1
        starts = jnp.arange(t_out) * s
        win = jnp.stack([x[:, starts + kk, :] for kk in range(k)], axis=2)
        y = jnp.einsum("btkc,kco->bto", win, w_eff) + lp["shift_raw"][None, None, :]
        x = jnp.where(y > 0, y, y * lp["alpha_raw"][None, None, :])
    return x[:, :t_final, :]


# ----------------------------------------------------------------------------
# UpstreamExpert.forward equivalent
# ----------------------------------------------------------------------------
def upstream_expert_forward(params, wavs):
    """list of unpadded 1-D wavs -> list of (extracted_seqlen_i, feature_dim)."""
    wav_lengths = [int(w.shape[0]) for w in wavs]
    max_len = max(wav_lengths)
    # pad_sequence(batch_first=True); the unsqueeze(1)/transpose(1,2) of the
    # reference are absorbed by the channels-last layout of the kernel output.
    padded = jnp.stack([jnp.pad(w, (0, max_len - int(w.shape[0]))) for w in wavs])

    feats = pase_encoder(params, padded)                 # (B, T', D)

    ratio = feats.shape[1] / wav_lengths[0]              # same ratio as reference
    feat_lengths = [round(l * ratio) for l in wav_lengths]
    return [feats[i, :l] for i, l in enumerate(feat_lengths)]


if __name__ == "__main__":
    key = jax.random.PRNGKey(0)
    key, k_p, k_w0, k_w1 = jax.random.split(key, 4)

    params = init_params(k_p)

    # Small "waveforms" (wav0 is the longest; lengths are multiples of 160).
    wav0 = jax.random.normal(k_w0, (1600,), jnp.float32)
    wav1 = jax.random.normal(k_w1, (1280,), jnp.float32)
    wavs = [wav0, wav1]

    features = upstream_expert_forward(params, wavs)
    features = [jax.block_until_ready(f) for f in features]

    # shapes: (10, 64) and (8, 64), downsample rate 160
    assert features[0].shape == (1600 // DOWNSAMPLE_RATE, OUTPUT_DIM), features[0].shape
    assert features[1].shape == (1280 // DOWNSAMPLE_RATE, OUTPUT_DIM), features[1].shape
    assert all(bool(jnp.all(jnp.isfinite(f))) for f in features)

    # Cross-check the fused block-banded Pallas kernel against a plain-JAX
    # unfused conv stack (loose tol: bf16 MXU operands vs f32 reference).
    padded = jnp.stack([jnp.pad(w, (0, 1600 - int(w.shape[0]))) for w in wavs])
    got = jax.block_until_ready(pase_encoder(params, padded))
    want = pase_reference(params, padded)
    err = float(jnp.max(jnp.abs(got - want)))
    assert err < 0.25, f"fused kernel mismatch vs reference: max abs err {err}"

    print("KERNEL_OK")
</pallas_src>

<mosaic_0001>
module attributes {stable_mosaic.version = 11 : i64} {
  func.func @_pase_fused_kernel(%arg0: i32, %arg1: i32, %arg2: memref<1x16x160xf32, #tpu.memory_space<vmem>>, %arg3: memref<1x8x160xf32, #tpu.memory_space<vmem>>, %arg4: memref<320x256xbf16, #tpu.memory_space<vmem>>, %arg5: memref<512x128xbf16, #tpu.memory_space<vmem>>, %arg6: memref<256x128xbf16, #tpu.memory_space<vmem>>, %arg7: memref<256x64xbf16, #tpu.memory_space<vmem>>, %arg8: memref<2x256xf32, #tpu.memory_space<vmem>>, %arg9: memref<2x128xf32, #tpu.memory_space<vmem>>, %arg10: memref<2x128xf32, #tpu.memory_space<vmem>>, %arg11: memref<2x64xf32, #tpu.memory_space<vmem>>, %arg12: memref<1x16x64xf32, #tpu.memory_space<vmem>>, %arg13: memref<24x160xf32, #tpu.memory_space<vmem>>, %arg14: memref<24x256xf32, #tpu.memory_space<vmem>>, %arg15: memref<24x128xf32, #tpu.memory_space<vmem>>, %arg16: memref<24x128xf32, #tpu.memory_space<vmem>>) attributes {dimension_semantics = [#tpu.dimension_semantics<parallel>, #tpu.dimension_semantics<parallel>], iteration_bounds = array<i64: 2, 1>, scalar_prefetch = 0 : i64, scratch_operands = 4 : i64, tpu.core_type = #tpu.core_type<tc>, window_params = [{transform_indices = @transform_0, window_bounds = array<i64: 1, 16, 160>}, {transform_indices = @transform_1, window_bounds = array<i64: 1, 8, 160>}, {pipeline_mode = #tpu.pipeline_mode<synchronous>, transform_indices = @transform_2, window_bounds = array<i64: 320, 256>}, {pipeline_mode = #tpu.pipeline_mode<synchronous>, transform_indices = @transform_3, window_bounds = array<i64: 512, 128>}, {pipeline_mode = #tpu.pipeline_mode<synchronous>, transform_indices = @transform_4, window_bounds = array<i64: 256, 128>}, {pipeline_mode = #tpu.pipeline_mode<synchronous>, transform_indices = @transform_5, window_bounds = array<i64: 256, 64>}, {pipeline_mode = #tpu.pipeline_mode<synchronous>, transform_indices = @transform_6, window_bounds = array<i64: 2, 256>}, {pipeline_mode = #tpu.pipeline_mode<synchronous>, transform_indices = @transform_7, window_bounds = array<i64: 2, 128>}, {pipeline_mode = #tpu.pipeline_mode<synchronous>, transform_indices = @transform_8, window_bounds = array<i64: 2, 128>}, {pipeline_mode = #tpu.pipeline_mode<synchronous>, transform_indices = @transform_9, window_bounds = array<i64: 2, 64>}, {transform_indices = @transform_10, window_bounds = array<i64: 1, 16, 64>}]} {
    %c0 = arith.constant 0 : index
    %c0_0 = arith.constant 0 : index
    %c0_1 = arith.constant 0 : index
    %0 = vector.load %arg2[%c0, %c0_0, %c0_1] : memref<1x16x160xf32, #tpu.memory_space<vmem>>, vector<1x16x160xf32>
    %1 = vector.shape_cast %0 : vector<1x16x160xf32> to vector<16x160xf32>
    %c0_2 = arith.constant 0 : index
    %c0_3 = arith.constant 0 : index
    %2 = vector.load %arg13[%c0_2, %c0_3] : memref<24x160xf32, #tpu.memory_space<vmem>>, vector<16x160xf32>
    tpu.vector_store %arg13[%c0_2, %c0_3], %1 {strides = array<i32>} : memref<24x160xf32, #tpu.memory_space<vmem>>, vector<16x160xf32>,
    %c0_4 = arith.constant 0 : index
    %c0_5 = arith.constant 0 : index
    %c0_6 = arith.constant 0 : index
    %3 = vector.load %arg3[%c0_4, %c0_5, %c0_6] : memref<1x8x160xf32, #tpu.memory_space<vmem>>, vector<1x8x160xf32>
    %4 = vector.shape_cast %3 : vector<1x8x160xf32> to vector<8x160xf32>
    %c16 = arith.constant 16 : index
    %c0_7 = arith.constant 0 : index
    %5 = vector.load %arg13[%c16, %c0_7] : memref<24x160xf32, #tpu.memory_space<vmem>>, vector<8x160xf32>
    tpu.vector_store %arg13[%c16, %c0_7], %4 {strides = array<i32>} : memref<24x160xf32, #tpu.memory_space<vmem>>, vector<8x160xf32>,
    %c0_8 = arith.constant 0 : index
    %c0_9 = arith.constant 0 : index
    %6 = vector.load %arg13[%c0_8, %c0_9] : memref<24x160xf32, #tpu.memory_space<vmem>>, vector<19x160xf32>
    %c1 = arith.constant 1 : index
    %c0_10 = arith.constant 0 : index
    %7 = vector.load %arg13[%c1, %c0_10] : memref<24x160xf32, #tpu.memory_space<vmem>>, vector<19x160xf32>
    %8 = tpu.concatenate %6, %7 in 1 : vector<19x160xf32>, vector<19x160xf32> -> vector<19x320xf32>
    %9 = arith.truncf %8 : vector<19x320xf32> to vector<19x320xbf16>
    %c0_11 = arith.constant 0 : index
    %c0_12 = arith.constant 0 : index
    %10 = vector.load %arg4[%c0_11, %c0_12] : memref<320x256xbf16, #tpu.memory_space<vmem>>, vector<320x256xbf16>
    %cst = arith.constant dense<0.000000e+00> : vector<19x256xf32>
    %11 = tpu.matmul %9, %10, %cst {dimension_numbers = #tpu.dot_dimension_numbers<[1], [0], [0], [1], [0, 0, 1, 1], [], []>} : vector<19x320xbf16>, vector<320x256xbf16>, vector<19x256xf32> -> vector<19x256xf32>
    %c0_13 = arith.constant 0 : index
    %c0_14 = arith.constant 0 : index
    %12 = vector.load %arg8[%c0_13, %c0_14] : memref<2x256xf32, #tpu.memory_space<vmem>>, vector<1x256xf32>
    %13 = vector.broadcast %12 : vector<1x256xf32> to vector<19x256xf32>
    %14 = arith.addf %11, %13 : vector<19x256xf32>
    %cst_15 = arith.constant 0.000000e+00 : f32
    %15 = vector.broadcast %cst_15 : f32 to vector<19x256xf32>
    %16 = arith.cmpf ogt, %14, %15 : vector<19x256xf32>
    %c1_16 = arith.constant 1 : index
    %c0_17 = arith.constant 0 : index
    %17 = vector.load %arg8[%c1_16, %c0_17] : memref<2x256xf32, #tpu.memory_space<vmem>>, vector<1x256xf32>
    %18 = vector.broadcast %17 : vector<1x256xf32> to vector<19x256xf32>
    %19 = arith.mulf %14, %18 : vector<19x256xf32>
    %20 = arith.select %16, %14, %19 : vector<19x256xi1>, vector<19x256xf32>
    %c0_18 = arith.constant 0 : index
    %c0_19 = arith.constant 0 : index
    %21 = vector.load %arg14[%c0_18, %c0_19] : memref<24x256xf32, #tpu.memory_space<vmem>>, vector<19x256xf32>
    tpu.vector_store %arg14[%c0_18, %c0_19], %20 {strides = array<i32>} : memref<24x256xf32, #tpu.memory_space<vmem>>, vector<19x256xf32>,
    %c0_20 = arith.constant 0 : index
    %c0_21 = arith.constant 0 : index
    %22 = vector.load %arg14[%c0_20, %c0_21] : memref<24x256xf32, #tpu.memory_space<vmem>>, vector<18x256xf32>
    %c1_22 = arith.constant 1 : index
    %c0_23 = arith.constant 0 : index
    %23 = vector.load %arg14[%c1_22, %c0_23] : memref<24x256xf32, #tpu.memory_space<vmem>>, vector<18x256xf32>
    %24 = tpu.concatenate %22, %23 in 1 : vector<18x256xf32>, vector<18x256xf32> -> vector<18x512xf32>
    %25 = arith.truncf %24 : vector<18x512xf32> to vector<18x512xbf16>
    %c0_24 = arith.constant 0 : index
    %c0_25 = arith.constant 0 : index
    %26 = vector.load %arg5[%c0_24, %c0_25] : memref<512x128xbf16, #tpu.memory_space<vmem>>, vector<512x128xbf16>
    %cst_26 = arith.constant dense<0.000000e+00> : vector<18x128xf32>
    %27 = tpu.matmul %25, %26, %cst_26 {dimension_numbers = #tpu.dot_dimension_numbers<[1], [0], [0], [1], [0, 0, 1, 1], [], []>} : vector<18x512xbf16>, vector<512x128xbf16>, vector<18x128xf32> -> vector<18x128xf32>
    %c0_27 = arith.constant 0 : index
    %c0_28 = arith.constant 0 : index
    %28 = vector.load %arg9[%c0_27, %c0_28] : memref<2x128xf32, #tpu.memory_space<vmem>>, vector<1x128xf32>
    %29 = vector.broadcast %28 : vector<1x128xf32> to vector<18x128xf32>
    %30 = arith.addf %27, %29 : vector<18x128xf32>
    %cst_29 = arith.constant 0.000000e+00 : f32
    %31 = vector.broadcast %cst_29 : f32 to vector<18x128xf32>
    %32 = arith.cmpf ogt, %30, %31 : vector<18x128xf32>
    %c1_30 = arith.constant 1 : index
    %c0_31 = arith.constant 0 : index
    %33 = vector.load %arg9[%c1_30, %c0_31] : memref<2x128xf32, #tpu.memory_space<vmem>>, vector<1x128xf32>
    %34 = vector.broadcast %33 : vector<1x128xf32> to vector<18x128xf32>
    %35 = arith.mulf %30, %34 : vector<18x128xf32>
    %36 = arith.select %32, %30, %35 : vector<18x128xi1>, vector<18x128xf32>
    %c0_32 = arith.constant 0 : index
    %c0_33 = arith.constant 0 : index
    %37 = vector.load %arg15[%c0_32, %c0_33] : memref<24x128xf32, #tpu.memory_space<vmem>>, vector<18x128xf32>
    tpu.vector_store %arg15[%c0_32, %c0_33], %36 {strides = array<i32>} : memref<24x128xf32, #tpu.memory_space<vmem>>, vector<18x128xf32>,
    %c0_34 = arith.constant 0 : index
    %c0_35 = arith.constant 0 : index
    %38 = vector.load %arg15[%c0_34, %c0_35] : memref<24x128xf32, #tpu.memory_space<vmem>>, vector<17x128xf32>
    %c1_36 = arith.constant 1 : index
    %c0_37 = arith.constant 0 : index
    %39 = vector.load %arg15[%c1_36, %c0_37] : memref<24x128xf32, #tpu.memory_space<vmem>>, vector<17x128xf32>
    %40 = tpu.concatenate %38, %39 in 1 : vector<17x128xf32>, vector<17x128xf32> -> vector<17x256xf32>
    %41 = arith.truncf %40 : vector<17x256xf32> to vector<17x256xbf16>
    %c0_38 = arith.constant 0 : index
    %c0_39 = arith.constant 0 : index
    %42 = vector.load %arg6[%c0_38, %c0_39] : memref<256x128xbf16, #tpu.memory_space<vmem>>, vector<256x128xbf16>
    %cst_40 = arith.constant dense<0.000000e+00> : vector<17x128xf32>
    %43 = tpu.matmul %41, %42, %cst_40 {dimension_numbers = #tpu.dot_dimension_numbers<[1], [0], [0], [1], [0, 0, 1, 1], [], []>} : vector<17x256xbf16>, vector<256x128xbf16>, vector<17x128xf32> -> vector<17x128xf32>
    %c0_41 = arith.constant 0 : index
    %c0_42 = arith.constant 0 : index
    %44 = vector.load %arg10[%c0_41, %c0_42] : memref<2x128xf32, #tpu.memory_space<vmem>>, vector<1x128xf32>
    %45 = vector.broadcast %44 : vector<1x128xf32> to vector<17x128xf32>
    %46 = arith.addf %43, %45 : vector<17x128xf32>
    %cst_43 = arith.constant 0.000000e+00 : f32
    %47 = vector.broadcast %cst_43 : f32 to vector<17x128xf32>
    %48 = arith.cmpf ogt, %46, %47 : vector<17x128xf32>
    %c1_44 = arith.constant 1 : index
    %c0_45 = arith.constant 0 : index
    %49 = vector.load %arg10[%c1_44, %c0_45] : memref<2x128xf32, #tpu.memory_space<vmem>>, vector<1x128xf32>
    %50 = vector.broadcast %49 : vector<1x128xf32> to vector<17x128xf32>
    %51 = arith.mulf %46, %50 : vector<17x128xf32>
    %52 = arith.select %48, %46, %51 : vector<17x128xi1>, vector<17x128xf32>
    %c0_46 = arith.constant 0 : index
    %c0_47 = arith.constant 0 : index
    %53 = vector.load %arg16[%c0_46, %c0_47] : memref<24x128xf32, #tpu.memory_space<vmem>>, vector<17x128xf32>
    tpu.vector_store %arg16[%c0_46, %c0_47], %52 {strides = array<i32>} : memref<24x128xf32, #tpu.memory_space<vmem>>, vector<17x128xf32>,
    %c0_48 = arith.constant 0 : index
    %c0_49 = arith.constant 0 : index
    %54 = vector.load %arg16[%c0_48, %c0_49] : memref<24x128xf32, #tpu.memory_space<vmem>>, vector<16x128xf32>
    %c1_50 = arith.constant 1 : index
    %c0_51 = arith.constant 0 : index
    %55 = vector.load %arg16[%c1_50, %c0_51] : memref<24x128xf32, #tpu.memory_space<vmem>>, vector<16x128xf32>
    %56 = tpu.concatenate %54, %55 in 1 : vector<16x128xf32>, vector<16x128xf32> -> vector<16x256xf32>
    %57 = arith.truncf %56 : vector<16x256xf32> to vector<16x256xbf16>
    %c0_52 = arith.constant 0 : index
    %c0_53 = arith.constant 0 : index
    %58 = vector.load %arg7[%c0_52, %c0_53] : memref<256x64xbf16, #tpu.memory_space<vmem>>, vector<256x64xbf16>
    %cst_54 = arith.constant dense<0.000000e+00> : vector<16x64xf32>
    %59 = tpu.matmul %57, %58, %cst_54 {dimension_numbers = #tpu.dot_dimension_numbers<[1], [0], [0], [1], [0, 0, 1, 1], [], []>} : vector<16x256xbf16>, vector<256x64xbf16>, vector<16x64xf32> -> vector<16x64xf32>
    %c0_55 = arith.constant 0 : index
    %c0_56 = arith.constant 0 : index
    %60 = vector.load %arg11[%c0_55, %c0_56] : memref<2x64xf32, #tpu.memory_space<vmem>>, vector<1x64xf32>
    %61 = vector.broadcast %60 : vector<1x64xf32> to vector<16x64xf32>
    %62 = arith.addf %59, %61 : vector<16x64xf32>
    %cst_57 = arith.constant 0.000000e+00 : f32
    %63 = vector.broadcast %cst_57 : f32 to vector<16x64xf32>
    %64 = arith.cmpf ogt, %62, %63 : vector<16x64xf32>
    %c1_58 = arith.constant 1 : index
    %c0_59 = arith.constant 0 : index
    %65 = vector.load %arg11[%c1_58, %c0_59] : memref<2x64xf32, #tpu.memory_space<vmem>>, vector<1x64xf32>
    %66 = vector.broadcast %65 : vector<1x64xf32> to vector<16x64xf32>
    %67 = arith.mulf %62, %66 : vector<16x64xf32>
    %68 = arith.select %64, %62, %67 : vector<16x64xi1>, vector<16x64xf32>
    %c0_60 = arith.constant 0 : index
    %c0_61 = arith.constant 0 : index
    %c0_62 = arith.constant 0 : index
    %69 = vector.load %arg12[%c0_60, %c0_61, %c0_62] : memref<1x16x64xf32, #tpu.memory_space<vmem>>, vector<1x16x64xf32>
    %70 = vector.shape_cast %69 : vector<1x16x64xf32> to vector<16x64xf32>
    %71 = vector.shape_cast %68 : vector<16x64xf32> to vector<1x16x64xf32>
    tpu.vector_store %arg12[%c0_60, %c0_61, %c0_62], %71 {strides = array<i32>} : memref<1x16x64xf32, #tpu.memory_space<vmem>>, vector<1x16x64xf32>,
    return
  }
  func.func @transform_0(%arg0: i32, %arg1: i32) -> (i32, i32, i32) {
    %c0_i32 = arith.constant 0 : i32
    %c0_i32_0 = arith.constant 0 : i32
    return %arg0, %arg1, %c0_i32 : i32, i32, i32
  }
  func.func @transform_1(%arg0: i32, %arg1: i32) -> (i32, i32, i32) {
    %c1_i32 = arith.constant 1 : i32
    %0 = arith.addi %arg1, %c1_i32 : i32
    %c2_i32 = arith.constant 2 : i32
    %1 = arith.muli %0, %c2_i32 : i32
    %c0_i32 = arith.constant 0 : i32
    %c0_i32_0 = arith.constant 0 : i32
    return %arg0, %1, %c0_i32 : i32, i32, i32
  }
  func.func @transform_2(%arg0: i32, %arg1: i32) -> (i32, i32) {
    %c0_i32 = arith.constant 0 : i32
    %c0_i32_0 = arith.constant 0 : i32
    %c0_i32_1 = arith.constant 0 : i32
    return %c0_i32, %c0_i32_0 : i32, i32
  }
  func.func @transform_3(%arg0: i32, %arg1: i32) -> (i32, i32) {
    %c0_i32 = arith.constant 0 : i32
    %c0_i32_0 = arith.constant 0 : i32
    %c0_i32_1 = arith.constant 0 : i32
    return %c0_i32, %c0_i32_0 : i32, i32
  }
  func.func @transform_4(%arg0: i32, %arg1: i32) -> (i32, i32) {
    %c0_i32 = arith.constant 0 : i32
    %c0_i32_0 = arith.constant 0 : i32
    %c0_i32_1 = arith.constant 0 : i32
    return %c0_i32, %c0_i32_0 : i32, i32
  }
  func.func @transform_5(%arg0: i32, %arg1: i32) -> (i32, i32) {
    %c0_i32 = arith.constant 0 : i32
    %c0_i32_0 = arith.constant 0 : i32
    %c0_i32_1 = arith.constant 0 : i32
    return %c0_i32, %c0_i32_0 : i32, i32
  }
  func.func @transform_6(%arg0: i32, %arg1: i32) -> (i32, i32) {
    %c0_i32 = arith.constant 0 : i32
    %c0_i32_0 = arith.constant 0 : i32
    %c0_i32_1 = arith.constant 0 : i32
    return %c0_i32, %c0_i32_0 : i32, i32
  }
  func.func @transform_7(%arg0: i32, %arg1: i32) -> (i32, i32) {
    %c0_i32 = arith.constant 0 : i32
    %c0_i32_0 = arith.constant 0 : i32
    %c0_i32_1 = arith.constant 0 : i32
    return %c0_i32, %c0_i32_0 : i32, i32
  }
  func.func @transform_8(%arg0: i32, %arg1: i32) -> (i32, i32) {
    %c0_i32 = arith.constant 0 : i32
    %c0_i32_0 = arith.constant 0 : i32
    %c0_i32_1 = arith.constant 0 : i32
    return %c0_i32, %c0_i32_0 : i32, i32
  }
  func.func @transform_9(%arg0: i32, %arg1: i32) -> (i32, i32) {
    %c0_i32 = arith.constant 0 : i32
    %c0_i32_0 = arith.constant 0 : i32
    %c0_i32_1 = arith.constant 0 : i32
    return %c0_i32, %c0_i32_0 : i32, i32
  }
  func.func @transform_10(%arg0: i32, %arg1: i32) -> (i32, i32, i32) {
    %c0_i32 = arith.constant 0 : i32
    %c0_i32_0 = arith.constant 0 : i32
    return %arg0, %arg1, %c0_i32 : i32, i32, i32
  }
}

</mosaic_0001>

<bundles_post_ra>
// kernel: tpu_custom_call.1
= control target key start
LH: loop header
LB: loop body
LE: loop exit
PB: predicated region body
PF: predicated region fallthrough
CT: control target
= control target key end

     0   :  { %s3151_s0 = inlined_call_operand.hbm [shape: f32[2,24,160], index: 0, kind: input, shape index: {}]   ;;  %s3152_s1 = inlined_call_operand.hbm [shape: f32[2,24,160], index: 1, kind: input, shape index: {}]   ;;  %s3153_s2 = inlined_call_operand.hbm [shape: bf16[320,256], index: 2, kind: input, shape index: {}]   ;;  %s3154_s3 = inlined_call_operand.hbm [shape: bf16[512,128], index: 3, kind: input, shape index: {}]   ;;  %s3155_s4 = inlined_call_operand.vmem [shape: bf16[256,128], index: 4, kind: input, shape index: {}]   ;;  %s3156_s5 = inlined_call_operand.vmem [shape: bf16[256,64], index: 5, kind: input, shape index: {}]   ;;  %s3157_s6 = inlined_call_operand.vmem [shape: f32[2,256], index: 6, kind: input, shape index: {}]   ;;  %s3158_s7 = inlined_call_operand.vmem [shape: f32[2,128], index: 7, kind: input, shape index: {}]   ;;  %s3159_s8 = inlined_call_operand.vmem [shape: f32[2,128], index: 8, kind: input, shape index: {}]   ;;  %s3160_s9 = inlined_call_operand.vmem [shape: f32[2,64], index: 9, kind: input, shape index: {}]   ;;  %s3161_s10 = inlined_call_operand.hbm [shape: f32[2,16,64], index: 10, kind: output, shape index: {}]  }
   0x1   :  { %3175 = sst [smem:[#allocation26_spill]] %s3151_s0 }
   0x2   :  { %3176 = sst [smem:[#allocation27_spill]] %s3153_s2 }
   0x3   :  { %3177 = sst [smem:[#allocation28_spill]] %s3154_s3 }
   0x4   :  { %3178 = sst [smem:[#allocation29_spill]] %s3160_s9 }
   0x5   :  { %3179 = sst [smem:[#allocation30_spill]] %s3161_s10 }
   0x6   :  { %15 = vsyncpa [#allocation7], 0 }
   0x7   :  { %17 = vsyncpa [#allocation7 + $0x1], 0 }
   0x8   :  { %18 = vsyncpa [#allocation10], 0 }
   0x9   :  { %20 = vsyncpa [#allocation10 + $0x1], 0 }
   0xa   :  { %21 = vsyncpa [#allocation13], 0 }
   0xb   :  { %22 = vsyncpa [#allocation8], 0 }
   0xc   :  { %24 = vsyncpa [#allocation8 + $0x1], 0  ;;  %s2694_s13 = smov 0   ;;  %s2696_s14 = smov 0  }
   0xd   :  { %s2698_s15 = smov 0   ;;  %s2700_s16 = smov 0  }
   0xe   :  { %s2702_s17 = smov 0   ;;  %s2704_s18 = smov 0  }
   0xf LB: > { %3180 = sst [smem:[#allocation20_spill]] %s2602_s13  ;;  %s2725_s19 = sadd.s32 4294967295, %s2622_s18   ;;  %s2622_s18 = sphi %s2704_s18, %s30_s18   ;;  %s2618_s17 = sphi %s2702_s17, %s3218_s17   ;;  %s2614_s16 = sphi %s2700_s16, %s3217_s16   ;;  %s2610_s15 = sphi %s2698_s15, %s3213_s15   ;;  %s2606_s14 = sphi %s2696_s14, %s3216_s14   ;;  %s2602_s13 = sphi %s2694_s13, %s3215_s13  }
  0x10   : > { %3181 = sst [smem:[#allocation21_spill]] %s2610_s15  ;;  %s1924_s20 = sadd.s32 4294967294, %s2622_s18  }
  0x11   : > { %p64_p0 = scmp.ne.s32.totalorder %s2606_s14, %s2602_s13  ;;  %p3163_p1 = scmp.eq.s32.totalorder %s2725_s19, 0 }
  0x12   : > { %p296_p3 = scmp.eq.s32.totalorder %s1924_s20, 1  ;;  %p1925_p5 = scmp.ge.s32.totalorder %s2622_s18, 1 }
  0x13   : > { %p2734_p4 = por %p3163_p1, %p64_p0  ;;  %p303_p7 = scmp.lt.s32.totalorder %s2622_s18, 3 }
  0x14   : > { %p2739_p6 = por %p296_p3, %p64_p0  ;;  %s2624_s24 = smov [#allocation11]  }
  0x15   : > { %s3182_s21 = scalar_select %p2734_p4, 1, 0 }
  0x16   : > { %s3183_s22 = scalar_select %p2739_p6, 1, 0 }
  0x17   : > { %p2744_p8 = pnand %p1925_p5, %p303_p7  ;;  %s315_s25 = sshll.u32 %s2624_s24, 4  ;;  %s2748_s25 = int_to_ptr.vmem [resolvable:$true] %s315_s25 }
  0x18   : > { %3184 = sst [smem:[#allocation22_spill]] %s3183_s22  ;;  %s2625_s27 = smov [#allocation12]  }
  0x19   : > { %s3185_s23 = scalar_select %p2744_p8, 1, 0 }
  0x1a   : > { %p2193_p9 = pneg %p2744_p8  ;;  %s328_s28 = sshll.u32 %s2625_s27, 4  ;;  %s2759_s28 = int_to_ptr.vmem [resolvable:$true] %s328_s28 }
  0x1b   : > { %s3187_s2 = sld [smem:[#allocation27_spill]] }
  0x1c   : > { %p2755_p11 = pnand %p2193_p9, %p3163_p1 }
  0x1e   : > { %p2413_p13 = pneg %p2755_p11 }
  0x21   : > { %s2411_s11 = scalar_lea.hbm %s3187_s2, 5120 }
  0x22   : > { %p2412_p12 = scmp.ne.s32.totalorder %s3187_s2, %s2411_s11  ;;  %p2418_p5 = scmp.lt.u32.totalorder %s2411_s11, %s3187_s2 }
  0x24   : > { %p2414_p0 = pnand %p2413_p13, %p2412_p12 }
  0x26   : > { %p2415_p3 = pneg %p2414_p0 }
  0x28   : > { %p2420_p7 = pnand %p2418_p5, %p2415_p3 }
  0x2a   : > { %2423 = shalt.err (!%p2420_p7)
}
  0x2b   : > { %s2424_s27 = scalar_lea.vmem %s2748_s25, 5120  ;;  %p2432_p2 = scmp.lt.s32.totalorder %s2748_s25, %s2748_s25 }
  0x2c   : > { %p2425_p9 = scmp.ne.s32.totalorder %s2748_s25, %s2424_s27  ;;  %p2433_p12 = scmp.lt.s32.totalorder %s2424_s27, %s2424_s27 }
  0x2e   : > { %p2427_p10 = pnand %p2425_p9, %p2413_p13  ;;  %p2434_p0 = por %p2433_p12, %p2432_p2 }
  0x30   : > { %p2428_p1 = pneg %p2427_p10 }
  0x32   : > { %p2435_p6 = pnand %p2434_p0, %p2428_p1 }
  0x34   : > { %2438 = shalt.err (!%p2435_p6)
}
  0x35   : > { %s2626_s22 = smov 128   ;;  %s2627_s29 = smov 8  }
  0x36   : > { %2196 = dma.hbm_to_vmem [thread:$0]  (!%p2755_p11), %s3187_s2, 5120, %s2748_s25, [#allocation10], %s2626_s22, %s2626_s22, %s2627_s29  }
  0x37   : > { %s3188_s3 = sld [smem:[#allocation28_spill]] }
  0x3d   : > { %s2439_s24 = scalar_lea.hbm %s3188_s3, 4096 }
  0x3e   : > { %p2440_p2 = scmp.ne.s32.totalorder %s3188_s3, %s2439_s24  ;;  %p2446_p10 = scmp.lt.u32.totalorder %s2439_s24, %s3188_s3 }
  0x40   : > { %p2442_p1 = pnand %p2440_p2, %p2413_p13 }
  0x42   : > { %p2443_p6 = pneg %p2442_p1 }
  0x44   : > { %p2448_p3 = pnand %p2446_p10, %p2443_p6 }
  0x46   : > { %2451 = shalt.err (!%p2448_p3)
}
  0x47   : > { %s2452_s25 = scalar_lea.vmem %s2759_s28, 4096  ;;  %p2460_p12 = scmp.lt.s32.totalorder %s2759_s28, %s2759_s28 }
  0x48   : > { %p2453_p5 = scmp.ne.s32.totalorder %s2759_s28, %s2452_s25  ;;  %p2461_p0 = scmp.lt.s32.totalorder %s2452_s25, %s2452_s25 }
  0x4a   : > { %p2455_p7 = pnand %p2453_p5, %p2413_p13  ;;  %p2462_p2 = por %p2461_p0, %p2460_p12 }
  0x4c   : > { %p2456_p9 = pneg %p2455_p7 }
  0x4e   : > { %p2463_p1 = pnand %p2462_p2, %p2456_p9 }
  0x50   : > { %2466 = shalt.err (!%p2463_p1)
}
  0x51   : > { %s2628_s9 = smov 64   ;;  %s2629_s10 = smov 4  }
  0x52   : > { %2199 = dma.hbm_to_vmem [thread:$0]  (!%p2755_p11), %s3188_s3, 4096, %s2759_s28, [#allocation13], %s2628_s9, %s2628_s9, %s2629_s10  }
  0x53   : > { %s42_s29 = sadd.s32 1, %s2618_s17  ;;  %s51_s30 = sadd.s32 1, %s2610_s15 }
  0x54   : > { %p44_p13 = scmp.ge.s32.totalorder %s42_s29, 2  ;;  %p58_p6 = scmp.ne.s32.totalorder %s2610_s15, %s2606_s14 }
  0x55   : > { %p59_p10 = scmp.eq.s32.totalorder %s2622_s18, 0  ;;  %p2213_p3 = scmp.lt.s32.totalorder %s2622_s18, 2 }
  0x56   : > { %s3220_s29 = smov (%p44_p13, %s42_s29), 0  ;;  %p3190_p7 = scmp.eq.s32.totalorder %s2725_s19, 1 }
  0x57   : > { %3189 = sst [smem:[#allocation23_spill]] %s3220_s29  ;;  %p60_p5 = por %p59_p10, %p58_p6 }
  0x58   : > { %p2823_p9 = por %p3190_p7, %p58_p6  ;;  %s46_s11 = ssub.s32 %s2618_s17, %s3220_s29 }
  0x59   : > { %s2830_s12 = sand.u32 1, %s2610_s15   ;;  %p49_p11 = scmp.eq.s32.totalorder %s46_s11, 0 }
  0x5a   : > { %s3191_s26 = scalar_select %p2823_p9, 1, 0 }
  0x5b   : > { %s1929_s28 = sshll.u32 %s2830_s12, 5  ;;  %s3167_s20 = smul.u32 768, %s2618_s17 }
  0x5c   : > { %3192 = sst [smem:[#allocation24_spill]] %s3191_s26  ;;  %s3194_s0 = sld [smem:[#allocation26_spill]] }
  0x5d   : > { %s2835_s24 = scalar_select %p49_p11, %s2610_s15, %s51_s30  }
  0x5e   : > { %s364_s10 = scalar_lea.vmem [#allocation6], %s1929_s28  ;;  %p2846_p12 = pnand %p2213_p3, %p60_p5 }
  0x5f   : > { %3193 = sst [smem:[#allocation25_spill]] %s2835_s24  ;;  %s381_s13 = sshll.u32 %s364_s10, 4  ;;  %s2850_s13 = int_to_ptr.vmem [resolvable:$true] %s381_s13 }
  0x60   : > { %p2469_p2 = pneg %p2846_p12 }
  0x62   : > { %s2842_s9 = scalar_lea.hbm %s3194_s0, %s3167_s20  ;;  %s2472_s25 = scalar_lea.hbm %s3194_s0, 1536 }
  0x63   : > { %s2467_s11 = scalar_lea.hbm %s2842_s9, 512  ;;  %p2473_p6 = scmp.lt.u32.totalorder %s2842_s9, %s3194_s0 }
  0x64   : > { %p2468_p0 = scmp.ne.s32.totalorder %s2842_s9, %s2467_s11  ;;  %p2474_p10 = scmp.lt.u32.totalorder %s2472_s25, %s2467_s11 }
  0x65   : > { %p2476_p5 = scmp.lt.u32.totalorder %s2467_s11, %s2842_s9 }
  0x66   : > { %p2470_p1 = pnand %p2469_p2, %p2468_p0  ;;  %p2475_p3 = por %p2474_p10, %p2473_p6 }
  0x68   : > { %p2471_p13 = pneg %p2470_p1  ;;  %p2477_p7 = por %p2476_p5, %p2475_p3 }
  0x6a   : > { %p2478_p11 = pnand %p2477_p7, %p2471_p13 }
  0x6c   : > { %2481 = shalt.err (!%p2478_p11)
}
  0x6d   : > { %s2482_s30 = scalar_lea.vmem %s2850_s13, 512  ;;  %s2630_s28 = smov [#allocation6]  }
  0x6e   : > { %p2483_p0 = scmp.ne.s32.totalorder %s2850_s13, %s2482_s30  ;;  %s2487_s27 = sshll.u32 %s2630_s28, 4  ;;  %s2488_s27 = int_to_ptr.vmem [resolvable:$false] %s2487_s27 }
  0x6f   : > { %s2489_s20 = scalar_lea.vmem %s2488_s27, 1024  ;;  %p2490_p4 = scmp.lt.s32.totalorder %s2850_s13, %s2488_s27 }
  0x70   : > { %p2485_p1 = pnand %p2483_p0, %p2469_p2  ;;  %p2491_p6 = scmp.lt.s32.totalorder %s2489_s20, %s2482_s30 }
  0x72   : > { %p2486_p9 = pneg %p2485_p1  ;;  %p2492_p10 = por %p2491_p6, %p2490_p4 }
  0x74   : > { %p2493_p3 = pnand %p2492_p10, %p2486_p9 }
  0x76   : > { %2496 = shalt.err (!%p2493_p3)
}
  0x77   : > { %s2631_s11 = smov 256   ;;  %s2632_s25 = smov 16  }
  0x78   : > { %s3196_s10 = scalar_lea.sflag [#allocation7], %s2830_s12  ;;  %s391_s28 = sand.u32 1, %s2622_s18  }
  0x79   : > { %2203 = dma.hbm_to_vmem [thread:$0]  (!%p2846_p12), %s2842_s9, 512, %s2850_s13, %s3196_s10, %s2631_s11, %s2631_s11, %s2632_s25  }
  0x7a   : > { %s1931_s0 = sshll.u32 %s2830_s12, 4  ;;  %s3197_s27 = smul.u32 768, %s2618_s17 }
  0x7b   : > { %s395_s3 = scalar_lea.vmem [#allocation9], %s1931_s0  ;;  %s392_s15 = scalar_lea.sflag [#allocation10], %s391_s28 }
  0x7c   : > { %s1836_s2 = scalar_lea.hbm %s3152_s1, %s3197_s27  ;;  %s407_s29 = sshll.u32 %s395_s3, 4  ;;  %s408_s29 = int_to_ptr.vmem [resolvable:$true] %s407_s29 }
  0x7d   : > { %s2887_s24 = scalar_lea.hbm %s1836_s2, 512  ;;  %s2527_s26 = scalar_lea.hbm %s1836_s2, 768 }
  0x7e   : > { %p2498_p4 = scmp.ne.s32.totalorder %s2887_s24, %s2527_s26  ;;  %s2502_s13 = scalar_lea.hbm %s3152_s1, 1536 }
  0x7f   : > { %p2503_p5 = scmp.lt.u32.totalorder %s2887_s24, %s3152_s1  ;;  %p2504_p7 = scmp.lt.u32.totalorder %s2502_s13, %s2527_s26 }
  0x80   : > { %p2500_p9 = pnand %p2498_p4, %p2469_p2  ;;  %p2506_p0 = scmp.lt.u32.totalorder %s2527_s26, %s2887_s24 }
  0x81   : > { %p2505_p11 = por %p2504_p7, %p2503_p5 }
  0x82   : > { %p2501_p13 = pneg %p2500_p9 }
  0x83   : > { %p2507_p1 = por %p2506_p0, %p2505_p11 }
  0x85   : > { %p2508_p6 = pnand %p2507_p1, %p2501_p13 }
  0x87   : > { %2511 = shalt.err (!%p2508_p6)
}
  0x88   : > { %s2512_s2 = scalar_lea.vmem %s408_s29, 256  ;;  %s2633_s3 = smov [#allocation9]  }
  0x89   : > { %p2513_p10 = scmp.ne.s32.totalorder %s408_s29, %s2512_s2  ;;  %s2517_s25 = sshll.u32 %s2633_s3, 4  ;;  %s2518_s25 = int_to_ptr.vmem [resolvable:$false] %s2517_s25 }
  0x8a   : > { %s2519_s10 = scalar_lea.vmem %s2518_s25, 512  ;;  %p2520_p9 = scmp.lt.s32.totalorder %s408_s29, %s2518_s25 }
  0x8b   : > { %p2515_p3 = pnand %p2513_p10, %p2469_p2  ;;  %p2521_p8 = scmp.lt.s32.totalorder %s2519_s10, %s2512_s2 }
  0x8d   : > { %p2516_p4 = pneg %p2515_p3  ;;  %p2522_p5 = por %p2521_p8, %p2520_p9 }
  0x8f   : > { %p2523_p7 = pnand %p2522_p5, %p2516_p4 }
  0x91   : > { %2526 = shalt.err (!%p2523_p7)
}
  0x92   : > { %2206 = dma.hbm_to_vmem [thread:$0]  (!%p2846_p12), %s2887_s24, 256, %s408_s29, %s392_s15  }
  0x93   : > { %p3198_p13 = scmp.ne.s32.totalorder %s3185_s23, 0 }
  0x94   : > { %s2910_s26 = sand.u32 (!%p3198_p13), 1, %s2606_s14   ;;  %p3199_p2 = scmp.ne.s32.totalorder (!%p3198_p13), %s3182_s21, 0 }
  0x95   : > { %416 = sbr.rel (%p3198_p13) target bundleno = 1290 (0x50a), region = 60  ;;  %s1934_s28 = sshll.u32 (!%p3198_p13), %s2910_s26, 5 }
  0x96   : > { %s419_s27 = scalar_lea.sflag (!%p3198_p13), [#allocation7], %s2910_s26  ;;  %s422_s30 = scalar_lea.vmem (!%p3198_p13), [#allocation6], %s1934_s28 }
  0x9c   : > { %2581 = dma.done.wait (%p3199_p2), %s419_s27, 512  }
  0x9d   : > { %2583 = vsyncadd (%p3199_p2), %s419_s27, 4294966784  ;;  %s427_s15 = sand.u32 1, %s2725_s19   ;;  %s1935_s23 = sshll.u32 %s2910_s26, 4 }
  0x9e   : > { %s428_s29 = scalar_lea.sflag [#allocation10], %s427_s15  ;;  %s431_s24 = scalar_lea.vmem [#allocation9], %s1935_s23 }
  0x9f   : > { %2585 = dma.done.wait (%p3199_p2), %s428_s29, 256  }
  0xa0   : > { %2587 = vsyncadd (%p3199_p2), %s428_s29, 4294967040  ;;  %p3200_p8 = scmp.eq.s32.totalorder %s2725_s19, 0 }
  0xa2   : > { %2589 = dma.done.wait (%p3200_p8), [#allocation10], 5120   ;;  %p3201_p12 = pmov %p3200_p8 }
  0xa3   : > { %p3202_p11 = pmov %p3200_p8 }
  0xa4   : > { %2591 = vsyncadd (%p3201_p12), [#allocation10], 4294962176 }
  0xa5   : > { %2593 = dma.done.wait (%p3202_p11), [#allocation13], 4096   ;;  %p3203_p0 = pmov %p3200_p8 }
  0xa6   : > { %vm496_vm0 = vcmask 261120   ;;  %v492_v0 = vld [vmem:[%s422_s30 + $0x8] sm:$0xff]  ;;  %v494_v1 = vld [vmem:[%s422_s30 + $0x18] sm:$0xff]  ;;  %v2937_v3 = vld [vmem:[%s422_s30] sm:$0xff]  ;;  %vm520_vm1 = vcmask 1046528   ;;  %s2634_s19 = smov 32  }
  0xa7   : > { %2595 = vsyncadd (%p3203_p0), [#allocation13], 4294963200  ;;  %v501_v2 = vld [vmem:[%s431_s24 + $0x8] sm:$0xff]  ;;  %497 = vst.msk [vmem:[#allocation2 + $0x8] sm:$0xff] %vm496_vm0, %v492_v0  ;;  %v2939_v4 = vld [vmem:[%s422_s30 + $0x10] sm:$0xff]  ;;  %vm813_vm2 = vcmask 523264  }
  0xa8   : > { %499 = vst.msk [vmem:[#allocation2 + $0x18] sm:$0xff] %vm496_vm0, %v494_v1  ;;  %503 = vst.msk [vmem:[#allocation2 + $0x28] sm:$0xff] %vm496_vm0, %v501_v2  ;;  %v500_v5 = vld [vmem:[%s431_s24] sm:$0xff]  ;;  %v555_v12 = vpack.c.bf16 %v2939_v4, %v2937_v3  ;;  %v522_v16 = vrot.slane %v2939_v4, 1  ;;  %v2349_v45 = vld [vmem:[#allocation12 + $0x48] sm:$0xff]   ;;  %s3204_s20 = sld [smem:[#allocation29_spill]] }
  0xa9   : > { %495 = vst [vmem:[#allocation2] sm:$0xff] %v2937_v3  ;;  %502 = vst [vmem:[#allocation2 + $0x20] sm:$0xff] %v500_v5  ;;  %v2287_v6 = vld [vmem:[#allocation11 + $0x4] ss:$8 sps:$4 sm:$0xff]   ;;  %v2289_v7 = vld [vmem:[#allocation11] ss:$8 sps:$4 sm:$0xff]  }
  0xaa   : > { %820 = vmatprep.subr.bf16.mxu0 %v2287_v6  ;;  %v2290_v8 = vld [vmem:[#allocation11 + $0x14] ss:$8 sps:$4 sm:$0xff]   ;;  %v2292_v9 = vld [vmem:[#allocation11 + $0x10] ss:$8 sps:$4 sm:$0xff]   ;;  %v2293_v10 = vld [vmem:[#allocation11 + $0x24] ss:$8 sps:$4 sm:$0xff]  }
  0xab   : > { %821 = vmatpush1.bf16.msra.mxu0 %v2289_v7  ;;  %v2295_v11 = vld [vmem:[#allocation11 + $0x20] ss:$8 sps:$4 sm:$0xff]   ;;  %v2296_v23 = vld [vmem:[#allocation11 + $0x34] ss:$8 sps:$4 sm:$0xff]   ;;  %v2298_v30 = vld [vmem:[#allocation11 + $0x30] ss:$8 sps:$4 sm:$0xff]  }
  0xac   : > { %822 = vmatprep.subr.bf16.mxu0 %v2290_v8  ;;  %v2299_v32 = vld [vmem:[#allocation11 + $0x44] ss:$8 sps:$4 sm:$0xff]   ;;  %v2301_v33 = vld [vmem:[#allocation11 + $0x40] ss:$8 sps:$4 sm:$0xff]   ;;  %v2302_v34 = vld [vmem:[#allocation11 + $0x54] ss:$8 sps:$4 sm:$0xff]  }
  0xad   : > { %v2304_v35 = vld [vmem:[#allocation11 + $0x50] ss:$8 sps:$4 sm:$0xff]   ;;  %v2305_v36 = vld [vmem:[#allocation11 + $0x64] ss:$8 sps:$4 sm:$0xff]   ;;  %v2307_v37 = vld [vmem:[#allocation11 + $0x60] ss:$8 sps:$4 sm:$0xff]  }
  0xae   : > { %v511_v14 = vld [vmem:[#allocation2 + $0x8] sm:$0xfe]  ;;  %v2311_v40 = vld [vmem:[#allocation11 + $0x84] ss:$8 sps:$4 sm:$0xff]   ;;  %v2313_v41 = vld [vmem:[#allocation11 + $0x80] ss:$8 sps:$4 sm:$0xff]  }
  0xaf   : > { %v2944_v13 = vld [vmem:[#allocation2 + $0x18] sm:$0xff]  ;;  %v513_v15 = vld [vmem:[#allocation2 + $0x28] sm:$0xf]  ;;  %v524_v17 = vrot.slane %v511_v14, 1  ;;  %823 = vmatpush1.bf16.msra.mxu0 %v2292_v9  ;;  %v2308_v38 = vld [vmem:[#allocation11 + $0x74] ss:$8 sps:$4 sm:$0xff]  }
  0xb0   : > { %v525_v18 = vrot.slane %v2944_v13, 1  ;;  %v529_v19 = vrot.slane %v513_v15, 1  ;;  %v510_v20 = vld [vmem:[#allocation2] sm:$0xfe]  ;;  %824 = vmatprep.subr.bf16.mxu0 %v2293_v10  ;;  %v2347_v43 = vld [vmem:[#allocation12 + $0x40] sm:$0xff]   ;;  %v2350_v47 = vld [vmem:[#allocation12 + $0x8] sm:$0xff]  }
  0xb1   : > { %v512_v21 = vld [vmem:[#allocation2 + $0x20] sm:$0xf]  ;;  %v521_v22 = vrot.slane %v510_v20, 1  ;;  %v2314_v42 = vld [vmem:[#allocation11 + $0x94] ss:$8 sps:$4 sm:$0xff]   ;;  %v2348_v44 = vld [vmem:[#allocation12] sm:$0xff]   ;;  %2058 = vmatprep.subr.bf16.mxu1 %v2347_v43 }
  0xb2   : > { %v526_v24 = vsel %vm520_vm1, %v524_v17, %v525_v18  ;;  %v530_v25 = vsel %vm520_vm1, %v525_v18, %v529_v19  ;;  %v527_v26 = vrot.slane %v512_v21, 1  ;;  %v2310_v39 = vld [vmem:[#allocation11 + $0x70] ss:$8 sps:$4 sm:$0xff]   ;;  %2059 = vmatpush3.bf16.msra.mxu1 %v2348_v44  ;;  %v2317_v49 = vld [vmem:[#allocation11 + $0xa4] ss:$8 sps:$4 sm:$0xff]   ;;  %s2057_s13 = sshll.u32 %s2614_s16, 8 }
  0xb3   : > { %v2282_v27 = vpack.i.bf16 %v530_v25, %v526_v24  ;;  %v523_v28 = vsel %vm520_vm1, %v521_v22, %v522_v16  ;;  %825 = vmatpush1.bf16.msra.mxu0 %v2295_v11  ;;  %v2316_v46 = vld [vmem:[#allocation11 + $0x90] ss:$8 sps:$4 sm:$0xff]   ;;  %2060 = vmatprep.subr.bf16.mxu1 %v2349_v45  ;;  %v2319_v51 = vld [vmem:[#allocation11 + $0xa0] ss:$8 sps:$4 sm:$0xff]   ;;  %v2320_v53 = vld [vmem:[#allocation11 + $0xb4] ss:$8 sps:$4 sm:$0xff]  }
  0xb4   : > { %v528_v29 = vsel %vm520_vm1, %v522_v16, %v527_v26  ;;  %826 = vmatprep.subr.bf16.mxu0 %v2296_v23  ;;  %v2351_v48 = vld [vmem:[#allocation12 + $0x50] sm:$0xff]   ;;  %v2353_v52 = vld [vmem:[#allocation12 + $0x58] sm:$0xff]   ;;  %v2323_v55 = vld [vmem:[#allocation11 + $0xc4] ss:$8 sps:$4 sm:$0xff]   ;;  %s480_s11 = scalar_lea.vmem [#allocation14], %s1935_s23  ;;  %s3205_s0 = sld [smem:[#allocation24_spill]] }
  0xb5   : > { %2283 = vrot.lane.b32.xlu1 %v2282_v27, %s2634_s19  ;;  %v2277_v31 = vpack.i.bf16 %v528_v29, %v523_v28  ;;  %v2352_v50 = vld [vmem:[#allocation12 + $0x10] sm:$0xff]   ;;  %v2325_v56 = vld [vmem:[#allocation11 + $0xc0] ss:$8 sps:$4 sm:$0xff]   ;;  %v2329_v59 = vld [vmem:[#allocation11 + $0xe4] ss:$8 sps:$4 sm:$0xff]   ;;  %s1790_s2 = sshll.u32 %s480_s11, 4  ;;  %s3100_s2 = int_to_ptr.vmem [resolvable:$true] %s1790_s2 }
  0xb6   : > { %2061 = vmatpush3.bf16.msra.mxu1 %v2350_v47  ;;  %v2322_v54 = vld [vmem:[#allocation11 + $0xb0] ss:$8 sps:$4 sm:$0xff]   ;;  %v2326_v57 = vld [vmem:[#allocation11 + $0xd4] ss:$8 sps:$4 sm:$0xff]   ;;  %v2331_v60 = vld [vmem:[#allocation11 + $0xe0] ss:$8 sps:$4 sm:$0xff]  }
  0xb7   : > { %2278 = vrot.lane.b32.xlu0 %v2277_v31, %s2634_s19  ;;  %827 = vmatpush1.bf16.msra.mxu0 %v2298_v30  ;;  %v2328_v58 = vld [vmem:[#allocation11 + $0xd0] ss:$8 sps:$4 sm:$0xff]   ;;  %v2332_v61 = vld [vmem:[#allocation11 + $0xf4] ss:$8 sps:$4 sm:$0xff]   ;;  %v2337_v63 = vld [vmem:[#allocation11 + $0x104] ss:$8 sps:$4 sm:$0xff]  }
  0xb8   : > { %828 = vmatprep.subr.bf16.mxu0 %v2299_v32  ;;  %2062 = vmatprep.subr.bf16.mxu1 %v2351_v48  ;;  %v2334_v62 = vld [vmem:[#allocation11 + $0xf0] ss:$8 sps:$4 sm:$0xff]   ;;  %v2335_v10 = vld [vmem:[#allocation11 + $0x100] ss:$8 sps:$4 sm:$0xff]   ;;  %v2340_v15 = vld [vmem:[#allocation11 + $0x114] ss:$8 sps:$4 sm:$0xff]  }
  0xb9   : > { %541 = vrot.lane.b32.xlu1 %v529_v19, %s2634_s19  ;;  %v505_v1 = vld [vmem:[#allocation2 + $0x8] sm:$0xff]  ;;  %v508_v18 = vld [vmem:[#allocation2 + $0x20] sm:$0x7]  ;;  %v2343_v19 = vld [vmem:[#allocation11 + $0x124] ss:$8 sps:$4 sm:$0xff]   ;;  %s3206_s10 = sld [smem:[#allocation30_spill]] }
  0xba   : > { %2063 = vmatpush3.bf16.msra.mxu1 %v2352_v50  ;;  %v509_v6 = vld [vmem:[#allocation2 + $0x28] sm:$0x7]  ;;  %v2341_v21 = vld [vmem:[#allocation11 + $0x120] ss:$8 sps:$4 sm:$0xff]   ;;  %v2346_v22 = vld [vmem:[#allocation11 + $0x134] ss:$8 sps:$4 sm:$0xff]  }
  0xbb   : > { %539 = vrot.lane.b32.xlu0 %v527_v26, %s2634_s19  ;;  %829 = vmatpush1.bf16.msra.mxu0 %v2301_v33  ;;  %v2338_v17 = vld [vmem:[#allocation11 + $0x110] ss:$8 sps:$4 sm:$0xff]   ;;  %v2635_v26 = vmov 0   ;;  %v2355_v31 = vld [vmem:[#allocation12 + $0x60] sm:$0xff]   ;;  %v2357_v33 = vld [vmem:[#allocation12 + $0x68] sm:$0xff]   ;;  %s1775_s16 = scalar_lea.sflag [#allocation8], %s2910_s26 }
  0xbc   : > { %830 = vmatprep.subr.bf16.mxu0 %v2302_v34  ;;  %2064 = vmatprep.subr.bf16.mxu1 %v2353_v52  ;;  %v2344_v25 = vld [vmem:[#allocation11 + $0x130] ss:$8 sps:$4 sm:$0xff]   ;;  %v2356_v32 = vld [vmem:[#allocation12 + $0x20] sm:$0xff]   ;;  %v2358_v34 = vld [vmem:[#allocation12 + $0x28] sm:$0xff]   ;;  %s2528_s23 = scalar_lea.vmem %s3100_s2, 256  ;;  %p3207_p6 = scmp.ne.s32.totalorder %s3205_s0, 0 }
  0xbd   : > { %v2354_v30 = vld [vmem:[#allocation12 + $0x18] sm:$0xff]   ;;  %v601_v43 = vld [vmem:[%s3157_s6] ss:$2 sm:$0x3]  ;;  %p2529_p1 = scmp.ne.s32.totalorder %s3100_s2, %s2528_s23  ;;  %s2636_s27 = smov [#allocation14]  }
  0xbe   : > { %2065 = vmatpush3.bf16.msra.mxu1 %v2354_v30  ;;  %v1981_v45 = vld [vmem:[%s3157_s6 + $0x1] ss:$2 sm:$0x3]  ;;  %s2532_s30 = sshll.u32 %s2636_s27, 4  ;;  %s2533_s30 = int_to_ptr.vmem [resolvable:$false] %s2532_s30 }
  0xbf   : > { %831 = vmatpush1.bf16.msra.mxu0 %v2304_v35  ;;  %2066 = vmatprep.subr.bf16.mxu1 %v2355_v31  ;;  %v2359_v35 = vld [vmem:[#allocation12 + $0x70] sm:$0xff]   ;;  %s3098_s28 = scalar_lea.hbm %s3206_s10, %s2057_s13  ;;  %p2530_p10 = pnand %p2529_p1, %p3207_p6 }
  0xc0   : > { %832 = vmatprep.subr.bf16.mxu0 %v2305_v36  ;;  %v2360_v36 = vld [vmem:[#allocation12 + $0x30] sm:$0xff]   ;;  %s2534_s15 = scalar_lea.vmem %s2533_s30, 512  ;;  %p2535_p4 = scmp.lt.s32.totalorder %s3100_s2, %s2533_s30 }
  0xc1   : > { %p2531_p3 = pneg %p2530_p10  ;;  %p2536_p9 = scmp.lt.s32.totalorder %s2534_s15, %s2528_s23 }
  0xc2   : > { %2067 = vmatpush3.bf16.msra.mxu1 %v2356_v32 }
  0xc3   : > { %833 = vmatpush1.bf16.msra.mxu0 %v2307_v37  ;;  %2068 = vmatprep.subr.bf16.mxu1 %v2357_v33  ;;  %v2361_v37 = vld [vmem:[#allocation12 + $0x78] sm:$0xff]   ;;  %v2372_v33 = vld [vmem:[#allocation12 + $0xa0] sm:$0xff]   ;;  %p2537_p5 = por %p2536_p9, %p2535_p4 }
  0xc4   : > { %834 = vmatprep.subr.bf16.mxu0 %v2308_v38  ;;  %v2362_v38 = vld [vmem:[#allocation12 + $0x38] sm:$0xff]  }
  0xc5   : > { %p2538_p7 = pnand %p2537_p5, %p2531_p3 }
  0xc6   : > { %2069 = vmatpush3.bf16.msra.mxu1 %v2358_v34 }
  0xc7   : > { %835 = vmatpush1.bf16.msra.mxu0 %v2310_v39  ;;  %2070 = vmatprep.subr.bf16.mxu1 %v2359_v35  ;;  %v2363_v39 = vld [vmem:[#allocation12 + $0xc0] sm:$0xff]   ;;  %v2373_v35 = vld [vmem:[#allocation12 + $0xe8] sm:$0xff]  }
  0xc8   : > { %836 = vmatprep.subr.bf16.mxu0 %v2311_v40  ;;  %v603_v40 = vlaneseq }
  0xca   : > { %2071 = vmatpush3.bf16.msra.mxu1 %v2360_v36  ;;  %v2374_v36 = vld [vmem:[#allocation12 + $0xa8] sm:$0xff]  }
  0xcb   : > { %837 = vmatpush1.bf16.msra.mxu0 %v2313_v41  ;;  %2072 = vmatprep.subr.bf16.mxu1 %v2361_v37  ;;  %v604_v41 = vshrl.u32 %v603_v40, 7  ;;  %v2375_v37 = vld [vmem:[#allocation12 + $0xf0] sm:$0xff]  }
  0xcc   : > { %838 = vmatprep.subr.bf16.mxu0 %v2314_v42 }
  0xcd   : > { %v605_v42 = vsub.s32 0, %v604_v41  ;;  %v609_v44 = vsub.s32 1, %v604_v41  ;;  %v2377_v41 = vld [vmem:[#allocation12 + $0xf8] sm:$0xff]  }
  0xce   : > { %2073 = vmatpush3.bf16.msra.mxu1 %v2362_v38 }
  0xcf   : > { %839 = vmatpush1.bf16.msra.mxu0 %v2316_v46  ;;  %2086 = vmatprep.subr.bf16.mxu1 %v2363_v39  ;;  %v606_v46 = vrot.slane %v601_v43, %v605_v42  ;;  %v610_v47 = vrot.slane %v601_v43, %v609_v44  ;;  %v934_v48 = vrot.slane %v1981_v45, %v605_v42  ;;  %v2376_v39 = vld [vmem:[#allocation12 + $0xb0] sm:$0xff]  }
  0xd0   : > { %840 = vmatprep.subr.bf16.mxu0 %v2317_v49  ;;  %v938_v50 = vrot.slane %v1981_v45, %v609_v44  ;;  %v2378_v45 = vld [vmem:[#allocation12 + $0xb8] sm:$0xff]  }
  0xd3   : > { %841 = vmatpush1.bf16.msra.mxu0 %v2319_v51 }
  0xd4   : > { %842 = vmatprep.subr.bf16.mxu0 %v2320_v53 }
  0xd7   : > { %843 = vmatpush1.bf16.msra.mxu0 %v2322_v54 }
  0xd8   : > { %844 = vmatprep.subr.bf16.mxu0 %v2323_v55 }
  0xdb   : > { %845 = vmatpush1.bf16.msra.mxu0 %v2325_v56 }
  0xdc   : > { %846 = vmatprep.subr.bf16.mxu0 %v2326_v57 }
  0xdf   : > { %847 = vmatpush1.bf16.msra.mxu0 %v2328_v58 }
  0xe0   : > { %848 = vmatprep.subr.bf16.mxu0 %v2329_v59 }
  0xe3   : > { %849 = vmatpush1.bf16.msra.mxu0 %v2331_v60 }
  0xe4   : > { %850 = vmatprep.subr.bf16.mxu0 %v2332_v61 }
  0xe7   : > { %851 = vmatpush1.bf16.msra.mxu0 %v2334_v62 }
  0xe8   : > { %871 = vmatprep.subr.bf16.mxu0 %v2337_v63 }
 0x127   : > { %v2284_v20 = vpop.permute.xlu1 %2283 }
 0x128   : > { %v2286_v23 = vunpack.i.h.bf16 %v2284_v20  ;;  %v2285_v24 = vunpack.i.l.bf16 %v2284_v20 }
 0x129   : > { %v2279_v0 = vpop.permute.xlu0 %2278 }
 0x12a   : > { %v2281_v2 = vunpack.i.h.bf16 %v2279_v0  ;;  %v2280_v5 = vunpack.i.l.bf16 %v2279_v0 }
 0x12b   : > { %v542_v27 = vpop.permute.xlu1 %541 }
 0x12c   : > { %v552_v7 = vsel %vm496_vm0, %v505_v1, %v2280_v5  ;;  %v553_v8 = vsel %vm496_vm0, %v2944_v13, %v2281_v2  ;;  %v558_v13 = vpack.c.bf16 %v508_v18, %v508_v18  ;;  %v544_v3 = vsel %vm496_vm0, %v2281_v2, %v2286_v23  ;;  %v2369_v23 = vld [vmem:[#allocation12 + $0xd8] sm:$0xff]  }
 0x12d   : > { %v556_v9 = vpack.c.bf16 %v553_v8, %v552_v7  ;;  %v540_v11 = vpop.permute.xlu0 %539  ;;  %v543_v4 = vsel %vm496_vm0, %v2280_v5, %v2285_v24 }
 0x12e   : > { %v554_v14 = vsel %vm496_vm0, %v509_v6, %v540_v11  ;;  %v545_v28 = vsel %vm496_vm0, %v540_v11, %v542_v27 }
 0x12f   : > { %852 = vmatprep.mubr.bf16.mxu0 %v556_v9  ;;  %v559_v16 = vpack.c.bf16 %v554_v14, %v554_v14  ;;  %v560_v29 = vpack.c.bf16 %v545_v28, %v545_v28  ;;  %v2364_v9 = vld [vmem:[#allocation12 + $0x80] sm:$0xff]   ;;  %v2365_v14 = vld [vmem:[#allocation12 + $0xc8] sm:$0xff]  }
 0x130   : > { %853 = vmatmul.mubr.bf16.vlgmr.msra.gmra.mrb[0].mxu0 %v555_v12  ;;  %v557_v12 = vpack.c.bf16 %v544_v3, %v543_v4 }
 0x131   : > { %872 = vmatpush1.bf16.msra.mxu0 %v2335_v10  ;;  %862 = vmatprep.mubr.bf16.mxu0 %v559_v16 }
 0x132   : > { %873 = vmatprep.subr.bf16.mxu0 %v2340_v15 }
 0x135   : > { %874 = vmatpush1.bf16.msra.mxu0 %v2338_v17 }
 0x136   : > { %875 = vmatprep.subr.bf16.mxu0 %v2343_v19  ;;  %v2366_v19 = vld [vmem:[#allocation12 + $0x88] sm:$0xff]  }
 0x138   : > { %863 = vmatmul.mubr.bf16.gmra.mrb[4].mxu0 %v558_v13  ;;  %v2367_v13 = vld [vmem:[#allocation12 + $0xd0] sm:$0xff]  }
 0x139   : > { %876 = vmatpush1.bf16.msra.mxu0 %v2341_v21  ;;  %903 = vmatprep.mubr.bf16.mxu0 %v2635_v26  ;;  %v2368_v21 = vld [vmem:[#allocation12 + $0x90] sm:$0xff]  }
 0x13a   : > { %877 = vmatprep.subr.bf16.mxu0 %v2346_v22 }
 0x13d   : > { %878 = vmatpush1.bf16.msra.mxu0 %v2344_v25 }
 0x140   : > { %1979 = vmatmul.mubr.msk.bf16.vlgmr.msra.gmra.mrb[0].mxu0 %vm813_vm2, %v557_v12  ;;  %v2371_v12 = vld [vmem:[#allocation12 + $0xe0] sm:$0xff]  }
 0x141   : > { %913 = vmatprep.mubr.bf16.mxu0 %v2635_v26  ;;  %v2370_v26 = vld [vmem:[#allocation12 + $0x98] sm:$0xff]  }
 0x148   : > { %1980 = vmatmul.mubr.msk.bf16.gmra.mrb[4].mxu0 %vm813_vm2, %v560_v29 }
 0x213   : > { %v905_v49 = vpop.f32.mrb[0].mxu0 }
 0x214   : > { %v2164_v51 = vadd.f32 %v905_v49, %v606_v46  ;;  %v907_v52 = vpop.f32.mrb[1].mxu0 }
 0x215   : > { %v2165_v53 = vadd.f32 %v907_v52, %v610_v47  ;;  %v909_v54 = vpop.f32.mrb[2].mxu0  ;;  %v2380_v52 = vld [vmem:[%s3155_s4] sm:$0xff]  }
 0x216   : > { %vm922_vm3 = vcmp.gt.f32.partialorder %v2164_v51, 0.0  ;;  %v941_v55 = vmul.f32 %v2164_v51, %v934_v48  ;;  %v2166_v56 = vadd.f32 %v909_v54, %v606_v46  ;;  %v911_v57 = vpop.f32.mrb[3].mxu0  ;;  %v2382_v54 = vld [vmem:[%s3155_s4 + $0x8] sm:$0xff]  }
 0x217   : > { %vm923_vm4 = vcmp.gt.f32.partialorder %v2165_v53, 0.0  ;;  %v942_v58 = vmul.f32 %v2165_v53, %v938_v50  ;;  %v2167_v59 = vadd.f32 %v911_v57, %v610_v47  ;;  %v2385_v57 = vld [vmem:[%s3155_s4 + $0x58] sm:$0xff]  }
 0x218   : > { %v947_v60 = vsel %vm922_vm3, %v2164_v51, %v941_v55  ;;  %vm924_vm5 = vcmp.gt.f32.partialorder %v2166_v56, 0.0  ;;  %v943_v61 = vmul.f32 %v2166_v56, %v934_v48  ;;  %v2379_v51 = vld [vmem:[%s3155_s4 + $0x40] sm:$0xff]   ;;  %v2383_v55 = vld [vmem:[%s3155_s4 + $0x50] sm:$0xff]  }
 0x219   : > { %953 = vst [vmem:[#allocation3] sm:$0xff] %v947_v60  ;;  %v948_v62 = vsel %vm923_vm4, %v2165_v53, %v942_v58  ;;  %vm925_vm6 = vcmp.gt.f32.partialorder %v2167_v59, 0.0  ;;  %v944_v63 = vmul.f32 %v2167_v59, %v938_v50  ;;  %v2381_v53 = vld [vmem:[%s3155_s4 + $0x48] sm:$0xff]   ;;  %v2386_v58 = vld [vmem:[%s3155_s4 + $0x18] sm:$0xff]  }
 0x21a   : > { %954 = vst [vmem:[#allocation3 + $0x8] sm:$0xff] %v948_v62  ;;  %v2970_v0 = vsel %vm924_vm5, %v2166_v56, %v943_v61  ;;  %v2384_v56 = vld [vmem:[%s3155_s4 + $0x10] sm:$0xff]   ;;  %v2389_v61 = vld [vmem:[%s3155_s4 + $0x68] sm:$0xff]  }
 0x21b   : > { %v950_v1 = vsel %vm925_vm6, %v2167_v59, %v944_v63  ;;  %v915_v2 = vpop.f32.mrb[4].mxu0  ;;  %v991_v5 = vpack.c.bf16 %v2970_v0, %v947_v60  ;;  %v976_v44 = vrot.slane %v2970_v0, 1  ;;  %v2387_v59 = vld [vmem:[%s3155_s4 + $0x60] sm:$0xff]   ;;  %v2391_v63 = vld [vmem:[%s3155_s4 + $0x70] sm:$0xff]  }
 0x21c   : > { %v2168_v6 = vadd.f32 %v915_v2, %v606_v46  ;;  %v917_v7 = vpop.f32.mrb[5].mxu0  ;;  %v992_v8 = vpack.c.bf16 %v950_v1, %v948_v62  ;;  %v979_v27 = vrot.slane %v950_v1, 1  ;;  %v2388_v60 = vld [vmem:[%s3155_s4 + $0x20] sm:$0xff]   ;;  %v2390_v62 = vld [vmem:[%s3155_s4 + $0x28] sm:$0xff]   ;;  %v2392_v0 = vld [vmem:[%s3155_s4 + $0x30] sm:$0xff]  }
 0x21d   : > { %v2169_v10 = vadd.f32 %v917_v7, %v610_v47  ;;  %v919_v11 = vpop.f32.mrb[6].mxu0  ;;  %v2393_v1 = vld [vmem:[%s3155_s4 + $0x78] sm:$0xff]  }
 0x21e   : > { %vm926_vm7 = vcmp.gt.f32.partialorder %v2168_v6, 0.0  ;;  %v945_v15 = vmul.f32 %v2168_v6, %v934_v48  ;;  %v920_v16 = vpop.f32.mrb[7].mxu0  ;;  %1292 = vmatprep.mubr.bf16.mxu1 %v992_v8  ;;  %v2394_v2 = vld [vmem:[%s3155_s4 + $0x38] sm:$0xff]  }
 0x21f   : > { %vm927_vm8 = vcmp.gt.f32.partialorder %v2169_v10, 0.0  ;;  %v946_v17 = vmul.f32 %v2169_v10, %v938_v50  ;;  %1293 = vmatmul.mubr.bf16.vlgmr.msra.gmra.mrb[0].mxu1 %v991_v5  ;;  %v2395_v5 = vld [vmem:[%s3156_s5 + $0x40] sm:$0xff]  }
 0x220   : > { %v951_v18 = vsel %vm926_vm7, %v2168_v6, %v945_v15  ;;  %2087 = vmatpush3.bf16.msra.mxu1 %v2364_v9  ;;  %v965_v40 = vld [vmem:[#allocation3] sm:$0xfe]  ;;  %v2396_v6 = vld [vmem:[%s3156_s5] sm:$0xff]   ;;  %2142 = vmatprep.subr.bf16.mxu0 %v2395_v5 }
 0x221   : > { %957 = vst [vmem:[#allocation3 + $0x20] sm:$0x7] %v951_v18  ;;  %v952_v20 = vsel %vm927_vm8, %v2169_v10, %v946_v17  ;;  %2088 = vmatprep.subr.bf16.mxu1 %v2365_v14  ;;  %v966_v22 = vld [vmem:[#allocation3 + $0x8] sm:$0xfe]  ;;  %v975_v43 = vrot.slane %v965_v40, 1  ;;  %2143 = vmatpush3.bf16.msra.mxu0 %v2396_v6 }
 0x222   : > { %958 = vst [vmem:[#allocation3 + $0x28] sm:$0x7] %v952_v20  ;;  %v978_v25 = vrot.slane %v966_v22, 1  ;;  %v1982_v20 = vld [vmem:[%s3158_s7] ss:$0 sm:$0xff] }
 0x223   : > { %v977_v47 = vsel %vm520_vm1, %v975_v43, %v976_v44  ;;  %v2033_v6 = vld [vmem:[%s3159_s8 + $0x1] ss:$0 sm:$0xff] }
 0x224   : > { %2089 = vmatpush3.bf16.msra.mxu1 %v2366_v19  ;;  %v980_v31 = vsel %vm520_vm1, %v978_v25, %v979_v27  ;;  %v2015_v25 = vld [vmem:[%s3158_s7 + $0x1] ss:$0 sm:$0xff] }
 0x225   : > { %2090 = vmatprep.subr.bf16.mxu1 %v2367_v13 }
 0x228   : > { %v963_v24 = vld [vmem:[#allocation3 + $0x20] sm:$0x3]  ;;  %2091 = vmatpush3.bf16.msra.mxu1 %v2368_v21 }
 0x229   : > { %v964_v3 = vld [vmem:[#allocation3 + $0x28] sm:$0x3]  ;;  %2092 = vmatprep.subr.bf16.mxu1 %v2369_v23  ;;  %v995_v30 = vpack.c.bf16 %v963_v24, %v963_v24  ;;  %v967_v38 = vld [vmem:[#allocation3 + $0x20] sm:$0x7] }
 0x22a   : > { %v968_v4 = vld [vmem:[#allocation3 + $0x28] sm:$0x7]  ;;  %v996_v28 = vpack.c.bf16 %v964_v3, %v964_v3  ;;  %v981_v42 = vrot.slane %v967_v38, 1 }
 0x22b   : > { %v983_v29 = vrot.slane %v968_v4, 1 }
 0x22c   : > { %1300 = vmatprep.mubr.bf16.mxu1 %v996_v28  ;;  %2093 = vmatpush3.bf16.msra.mxu1 %v2370_v26  ;;  %v982_v46 = vsel %vm520_vm1, %v976_v44, %v981_v42  ;;  %v997_v50 = vpack.c.bf16 %v981_v42, %v981_v42 }
 0x22d   : > { %v984_v32 = vsel %vm520_vm1, %v979_v27, %v983_v29  ;;  %1301 = vmatmul.mubr.bf16.gmra.mrb[4].mxu1 %v995_v30  ;;  %2094 = vmatprep.subr.bf16.mxu1 %v2371_v12  ;;  %v993_v48 = vpack.c.bf16 %v982_v46, %v977_v47  ;;  %v998_v49 = vpack.c.bf16 %v983_v29, %v983_v29 }
 0x22e   : > { %v994_v34 = vpack.c.bf16 %v984_v32, %v980_v31 }
 0x230   : > { %1340 = vmatprep.mubr.bf16.mxu1 %v994_v34  ;;  %2095 = vmatpush3.bf16.msra.mxu1 %v2372_v33 }
 0x231   : > { %2096 = vmatprep.subr.bf16.mxu1 %v2373_v35 }
 0x234   : > { %2097 = vmatpush3.bf16.msra.mxu1 %v2374_v36 }
 0x235   : > { %2098 = vmatprep.subr.bf16.mxu1 %v2375_v37 }
 0x238   : > { %2099 = vmatpush3.bf16.msra.mxu1 %v2376_v39 }
 0x239   : > { %2100 = vmatprep.subr.bf16.mxu1 %v2377_v41 }
 0x23c   : > { %2101 = vmatpush3.bf16.msra.mxu1 %v2378_v45 }
 0x23d   : > { %2114 = vmatprep.subr.bf16.mxu1 %v2379_v51  ;;  %v2399_v51 = vld [vmem:[%s3156_s5 + $0x50] sm:$0xff]  }
 0x23f   : > { %1341 = vmatmul.mubr.bf16.vlgmr.msra.gmra.mrb[8].mxu1 %v993_v48 }
 0x240   : > { %1348 = vmatprep.mubr.bf16.mxu1 %v998_v49  ;;  %2115 = vmatpush3.bf16.msra.mxu1 %v2380_v52  ;;  %v2397_v49 = vld [vmem:[%s3156_s5 + $0x48] sm:$0xff]   ;;  %v2400_v52 = vld [vmem:[%s3156_s5 + $0x10] sm:$0xff]  }
 0x241   : > { %2116 = vmatprep.subr.bf16.mxu1 %v2381_v53  ;;  %2144 = vmatprep.subr.bf16.mxu0 %v2397_v49  ;;  %v2401_v53 = vld [vmem:[%s3156_s5 + $0x58] sm:$0xff]  }
 0x244   : > { %2117 = vmatpush3.bf16.msra.mxu1 %v2382_v54  ;;  %v2402_v54 = vld [vmem:[%s3156_s5 + $0x18] sm:$0xff]  }
 0x245   : > { %2118 = vmatprep.subr.bf16.mxu1 %v2383_v55  ;;  %v2403_v55 = vld [vmem:[%s3156_s5 + $0x60] sm:$0xff]  }
 0x247   : > { %1349 = vmatmul.mubr.bf16.gmra.mrb[12].mxu1 %v997_v50  ;;  %v2398_v50 = vld [vmem:[%s3156_s5 + $0x8] sm:$0xff]  }
 0x248   : > { %2119 = vmatpush3.bf16.msra.mxu1 %v2384_v56  ;;  %2145 = vmatpush3.bf16.msra.mxu0 %v2398_v50  ;;  %v2404_v56 = vld [vmem:[%s3156_s5 + $0x20] sm:$0xff]  }
 0x249   : > { %2120 = vmatprep.subr.bf16.mxu1 %v2385_v57  ;;  %2146 = vmatprep.subr.bf16.mxu0 %v2399_v51  ;;  %v2405_v57 = vld [vmem:[%s3156_s5 + $0x68] sm:$0xff]  }
 0x24c   : > { %2121 = vmatpush3.bf16.msra.mxu1 %v2386_v58  ;;  %2147 = vmatpush3.bf16.msra.mxu0 %v2400_v52  ;;  %v2406_v58 = vld [vmem:[%s3156_s5 + $0x28] sm:$0xff]  }
 0x24d   : > { %2122 = vmatprep.subr.bf16.mxu1 %v2387_v59  ;;  %2148 = vmatprep.subr.bf16.mxu0 %v2401_v53  ;;  %v2407_v59 = vld [vmem:[%s3156_s5 + $0x70] sm:$0xff]  }
 0x250   : > { %2123 = vmatpush3.bf16.msra.mxu1 %v2388_v60  ;;  %2149 = vmatpush3.bf16.msra.mxu0 %v2402_v54  ;;  %v2408_v60 = vld [vmem:[%s3156_s5 + $0x30] sm:$0xff]  }
 0x251   : > { %2124 = vmatprep.subr.bf16.mxu1 %v2389_v61  ;;  %2150 = vmatprep.subr.bf16.mxu0 %v2403_v55  ;;  %v2409_v61 = vld [vmem:[%s3156_s5 + $0x78] sm:$0xff]  }
 0x254   : > { %2125 = vmatpush3.bf16.msra.mxu1 %v2390_v62  ;;  %2151 = vmatpush3.bf16.msra.mxu0 %v2404_v56  ;;  %v2410_v62 = vld [vmem:[%s3156_s5 + $0x38] sm:$0xff]  }
 0x255   : > { %2126 = vmatprep.subr.bf16.mxu1 %v2391_v63  ;;  %2152 = vmatprep.subr.bf16.mxu0 %v2405_v57 }
 0x258   : > { %2127 = vmatpush3.bf16.msra.mxu1 %v2392_v0  ;;  %2153 = vmatpush3.bf16.msra.mxu0 %v2406_v58  ;;  %v2016_v0 = vld [vmem:[%s3159_s8] ss:$0 sm:$0xff] }
 0x259   : > { %2128 = vmatprep.subr.bf16.mxu1 %v2393_v1  ;;  %2154 = vmatprep.subr.bf16.mxu0 %v2407_v59 }
 0x25c   : > { %2129 = vmatpush3.bf16.msra.mxu1 %v2394_v2  ;;  %2155 = vmatpush3.bf16.msra.mxu0 %v2408_v60 }
 0x25d   : > { %2156 = vmatprep.subr.bf16.mxu0 %v2409_v61 }
 0x260   : > { %2157 = vmatpush3.bf16.msra.mxu0 %v2410_v62 }
 0x2f2   : > { %v2074_v7 = vpop.f32.mrb[0].mxu1 }
 0x2f3   : > { %v2075_v8 = vpop.f32.mrb[1].mxu1 }
 0x2f4   : > { %v2076_v9 = vadd.f32 %v2075_v8, %v2074_v7  ;;  %v2077_v10 = vpop.f32.mrb[2].mxu1 }
 0x2f5   : > { %v2078_v11 = vpop.f32.mrb[3].mxu1 }
 0x2f6   : > { %v2079_v14 = vadd.f32 %v2078_v11, %v2077_v10  ;;  %v1295_v22 = vadd.f32 %v2076_v9, %v1982_v20 }
 0x2f8   : > { %v1298_v3 = vadd.f32 %v2079_v14, %v1982_v20 }
 0x300   : > { %v2080_v15 = vpop.f32.mrb[4].mxu1 }
 0x301   : > { %v2081_v16 = vpop.f32.mrb[5].mxu1 }
 0x302   : > { %v2082_v17 = vadd.f32 %v2081_v16, %v2080_v15  ;;  %v2083_v18 = vpop.f32.mrb[6].mxu1 }
 0x303   : > { %v2084_v19 = vpop.f32.mrb[7].mxu1 }
 0x304   : > { %v1303_v33 = vadd.f32 %v2082_v17, %v1982_v20 }
 0x312   : > { %v2102_v13 = vpop.f32.mrb[8].mxu1 }
 0x313   : > { %v2103_v21 = vpop.f32.mrb[9].mxu1 }
 0x314   : > { %v2104_v23 = vadd.f32 %v2103_v21, %v2102_v13  ;;  %v2105_v24 = vpop.f32.mrb[10].mxu1 }
 0x315   : > { %v2106_v26 = vpop.f32.mrb[11].mxu1 }
 0x316   : > { %v1343_v4 = vadd.f32 %v2104_v23, %v1295_v22  ;;  %v2107_v12 = vadd.f32 %v2106_v26, %v2105_v24 }
 0x318   : > { %vm1356_vm9 = vcmp.gt.f32.partialorder %v1343_v4, 0.0  ;;  %v1364_v27 = vmul.f32 %v2015_v25, %v1343_v4  ;;  %v1346_v28 = vadd.f32 %v2107_v12, %v1298_v3  ;;  %v2034_v12 = vld [vmem:[%s3204_s20] ss:$0 sm:$0xff] }
 0x31a   : > { %v1367_v29 = vsel %vm1356_vm9, %v1343_v4, %v1364_v27  ;;  %vm1357_vm10 = vcmp.gt.f32.partialorder %v1346_v28, 0.0  ;;  %v1365_v30 = vmul.f32 %v2015_v25, %v1346_v28  ;;  %v2108_v31 = vpop.f32.mrb[12].mxu1 }
 0x31b   : > { %1370 = vst [vmem:[#allocation4] sm:$0xff] %v1367_v29  ;;  %v2109_v32 = vpop.f32.mrb[13].mxu1 }
 0x31c   : > { %v1368_v34 = vsel %vm1357_vm10, %v1346_v28, %v1365_v30  ;;  %v2110_v35 = vadd.f32 %v2109_v32, %v2108_v31  ;;  %v2111_v36 = vpop.f32.mrb[14].mxu1  ;;  %v2051_v30 = vld [vmem:[%s3204_s20 + $0x1] ss:$0 sm:$0xff] }
 0x31d   : > { %1371 = vst [vmem:[#allocation4 + $0x8] sm:$0xff] %v1368_v34  ;;  %v2112_v37 = vpop.f32.mrb[15].mxu1  ;;  %v1379_v38 = vpack.c.bf16 %v1368_v34, %v1367_v29 }
 0x31e   : > { %v1351_v39 = vadd.f32 %v2110_v35, %v1303_v33 }
 0x320   : > { %vm1358_vm11 = vcmp.gt.f32.partialorder %v1351_v39, 0.0  ;;  %v1366_v40 = vmul.f32 %v2015_v25, %v1351_v39 }
 0x322   : > { %v1369_v41 = vsel %vm1358_vm11, %v1351_v39, %v1366_v40 }
 0x323   : > { %1372 = vst [vmem:[#allocation4 + $0x10] sm:$0x3] %v1369_v41 }
 0x324   : > { %v1376_v42 = vld [vmem:[#allocation4 + $0x1] sm:$0xff] }
 0x32a   : > { %v1377_v43 = vld [vmem:[#allocation4 + $0x9] sm:$0xff]  ;;  %v1378_v44 = vld [vmem:[#allocation4 + $0x11] sm:$0x1] }
 0x32b   : > { %v1380_v45 = vpack.c.bf16 %v1377_v43, %v1376_v42  ;;  %v1382_v46 = vpack.c.bf16 %v1378_v44, %v1378_v44  ;;  %v1375_v47 = vld [vmem:[#allocation4 + $0x10] sm:$0x1] }
 0x32c   : > { %v1381_v48 = vpack.c.bf16 %v1375_v47, %v1375_v47 }
 0x32d   : > { %1548 = vmatprep.mubr.bf16.mxu1 %v1380_v45 }
 0x32e   : > { %1549 = vmatmul.mubr.bf16.vlgmr.msra.gmra.mrb[16].mxu1 %v1379_v38 }
 0x32f   : > { %1556 = vmatprep.mubr.bf16.mxu1 %v1382_v46 }
 0x336   : > { %1557 = vmatmul.mubr.bf16.gmra.mrb[20].mxu1 %v1381_v48 }
 0x401   : > { %v2130_v63 = vpop.f32.mrb[16].mxu1 }
 0x402   : > { %v2131_v1 = vpop.f32.mrb[17].mxu1 }
 0x403   : > { %v2132_v2 = vadd.f32 %v2131_v1, %v2130_v63  ;;  %v2133_v5 = vpop.f32.mrb[18].mxu1 }
 0x404   : > { %v2134_v7 = vpop.f32.mrb[19].mxu1 }
 0x405   : > { %v1551_v8 = vadd.f32 %v2132_v2, %v2016_v0  ;;  %v2135_v9 = vadd.f32 %v2134_v7, %v2133_v5 }
 0x407   : > { %vm1564_vm12 = vcmp.gt.f32.partialorder %v1551_v8, 0.0  ;;  %v1572_v10 = vmul.f32 %v2033_v6, %v1551_v8  ;;  %v1554_v11 = vadd.f32 %v2135_v9, %v2016_v0 }
 0x409   : > { %v1575_v14 = vsel %vm1564_vm12, %v1551_v8, %v1572_v10  ;;  %vm1565_vm13 = vcmp.gt.f32.partialorder %v1554_v11, 0.0  ;;  %v1573_v15 = vmul.f32 %v2033_v6, %v1554_v11  ;;  %v2136_v16 = vpop.f32.mrb[20].mxu1 }
 0x40a   : > { %1578 = vst [vmem:[#allocation5] sm:$0xff] %v1575_v14  ;;  %v2137_v17 = vpop.f32.mrb[21].mxu1 }
 0x40b   : > { %v1576_v18 = vsel %vm1565_vm13, %v1554_v11, %v1573_v15  ;;  %v2138_v19 = vadd.f32 %v2137_v17, %v2136_v16  ;;  %v2139_v20 = vpop.f32.mrb[22].mxu1 }
 0x40c   : > { %1579 = vst [vmem:[#allocation5 + $0x8] sm:$0xff] %v1576_v18  ;;  %v2140_v13 = vpop.f32.mrb[23].mxu1  ;;  %v1585_v21 = vpack.c.bf16 %v1576_v18, %v1575_v14 }
 0x40d   : > { %v1559_v22 = vadd.f32 %v2138_v19, %v2016_v0 }
 0x40f   : > { %vm1566_vm14 = vcmp.gt.f32.partialorder %v1559_v22, 0.0  ;;  %v1574_v23 = vmul.f32 %v2033_v6, %v1559_v22 }
 0x411   : > { %v1577_v24 = vsel %vm1566_vm14, %v1559_v22, %v1574_v23 }
 0x412   : > { %1580 = vst [vmem:[#allocation5 + $0x10] sm:$0x1] %v1577_v24 }
 0x413   : > { %v1583_v25 = vld [vmem:[#allocation5 + $0x1] sm:$0xff] }
 0x419   : > { %v1584_v26 = vld [vmem:[#allocation5 + $0x9] sm:$0xff] }
 0x41a   : > { %v1586_v3 = vpack.c.bf16 %v1584_v26, %v1583_v25 }
 0x41c   : > { %1752 = vmatprep.mubr.bf16.mxu0 %v1586_v3 }
 0x41d   : > { %1753 = vmatmul.mubr.bf16.vlgmr.msra.gmra.mrb[8].mxu0 %v1585_v21 }
 0x4f0   : > { %v2158_v4 = vpop.f32.mrb[8].mxu0 }
 0x4f1   : > { %v2159_v27 = vpop.f32.mrb[9].mxu0 }
 0x4f2   : > { %v2160_v28 = vadd.f32 %v2159_v27, %v2158_v4  ;;  %v2161_v29 = vpop.f32.mrb[10].mxu0 }
 0x4f3   : > { %v2162_v31 = vpop.f32.mrb[11].mxu0 }
 0x4f4   : > { %v1755_v32 = vadd.f32 %v2160_v28, %v2034_v12  ;;  %v2163_v33 = vadd.f32 %v2162_v31, %v2161_v29 }
 0x4f6   : > { %vm1761_vm15 = vcmp.gt.f32.partialorder %v1755_v32, 0.0  ;;  %v1768_v34 = vmul.f32 %v2051_v30, %v1755_v32  ;;  %v1758_v35 = vadd.f32 %v2163_v33, %v2034_v12 }
 0x4f8   : > { %v1770_v36 = vsel %vm1761_vm15, %v1755_v32, %v1768_v34  ;;  %vm1762_vm0 = vcmp.gt.f32.partialorder %v1758_v35, 0.0  ;;  %v1769_v37 = vmul.f32 %v2051_v30, %v1758_v35 }
 0x4f9   : > { %1772 = vst.msk [vmem:[%s480_s11] sm:$0xff] %vm813_vm2, %v1770_v36 }
 0x4fa   : > { %v1771_v38 = vsel %vm1762_vm0, %v1758_v35, %v1769_v37 }
 0x4fb   : > { %1773 = vst.msk [vmem:[%s480_s11 + $0x8] sm:$0xff] %vm813_vm2, %v1771_v38 }
 0x4fc   : > { %2541 = shalt.err (!%p2538_p7)
}
 0x4fd   : > { %s2542_s29 = scalar_lea.hbm %s3098_s28, 256  ;;  %s2546_s21 = scalar_lea.hbm %s3206_s10, 512 }
 0x4fe   : > { %p2543_p13 = scmp.ne.s32.totalorder %s3098_s28, %s2542_s29  ;;  %p2547_p12 = scmp.lt.u32.totalorder %s3098_s28, %s3206_s10 }
 0x4ff   : > { %p2548_p11 = scmp.lt.u32.totalorder %s2546_s21, %s2542_s29  ;;  %p2550_p1 = scmp.lt.u32.totalorder %s2542_s29, %s3098_s28 }
 0x500   : > { %p2544_p2 = pnand %p2543_p13, %p3207_p6 }
 0x501   : > { %p2549_p0 = por %p2548_p11, %p2547_p12 }
 0x502   : > { %p2545_p8 = pneg %p2544_p2 }
 0x503   : > { %p2551_p10 = por %p2550_p1, %p2549_p0 }
 0x505   : > { %p2552_p3 = pnand %p2551_p10, %p2545_p8 }
 0x507   : > { %2555 = shalt.err (!%p2552_p3)
}
 0x508   : > { %s2637_s9 = smov 128   ;;  %s2638_s13 = smov 8  }
 0x509   : > { %2191 = dma.vmem_to_hbm [thread:$0]  (%p3207_p6), %s3100_s2, 256, %s3098_s28, %s1775_s16, %s2637_s9, %s2637_s9, %s2638_s13  }
 0x50a PF: > { %s3208_s11 = sld [smem:[#allocation20_spill]]  ;;  %s3209_s3 = sld [smem:[#allocation22_spill]] }
 0x50b   : > { %p3211_p9 = scmp.ge.s32.totalorder %s2622_s18, 2 }
 0x510   : > { %s1805_s25 = sand.u32 1, %s3208_s11   ;;  %p3210_p4 = scmp.ne.s32.totalorder %s3209_s3, 0 }
 0x511   : > { %s1806_s23 = scalar_lea.sflag [#allocation8], %s1805_s25 }
 0x512   : > { %p2208_p5 = pnand %p3211_p9, %p3210_p4 }
 0x514   : > { %2597 = dma.done.wait (!%p2208_p5), %s1806_s23, 256  }
 0x515   : > { %2599 = vsyncadd (!%p2208_p5), %s1806_s23, 4294967040  ;;  %s30_s18 = sadd.s32 1, %s2622_s18   ;;  %s3212_s27 = sld [smem:[#allocation21_spill]] }
 0x516   : > { %p27_p7 = scmp.ge.s32.totalorder %s30_s18, 4   ;;  %s3213_s15 = sld [smem:[#allocation25_spill]] }
 0x517   : > { %s3214_s26 = sld [smem:[#allocation23_spill]]  ;;  %s3215_s13 = smov %s2606_s14 }
 0x518   : > { %s3217_s16 = smov %s2618_s17  ;;  %29 = sbr.rel (!%p27_p7) target bundleno = 15 (0xf), region = 127 }
 0x51b   : > { %s3216_s14 = smov %s3212_s27 }
 0x51d   : > { %s3218_s17 = smov %s3214_s26 }
 0x51f   :  { %1811 = vsyncpa [#allocation7], 1 }
 0x520   :  { %1813 = vsyncpa [#allocation7 + $0x1], 1 }
 0x521   :  { %1814 = vsyncpa [#allocation10], 1 }
 0x522   :  { %1816 = vsyncpa [#allocation10 + $0x1], 1 }
 0x523   :  { %1817 = vsyncpa [#allocation13], 1 }
 0x524   :  { %1818 = vsyncpa [#allocation8], 1 }
 0x525   :  { %1820 = vsyncpa [#allocation8 + $0x1], 1 }

</bundles_post_ra>
